<compile_context>
chip_gen: v6e
topology: v6e:2x2x1
jax: 0.10.0
libtpu: 0.0.40
codegen_flags: <defaults>
</compile_context>

<pallas_src>
import jax
import jax.numpy as jnp
from jax.experimental import pallas as pl
from jax.experimental.pallas import tpu as pltpu  # noqa: F401  (TPU backend)

EPS = 1e-5


def bn_add_relu_kernel(x_ref, gamma_ref, beta_ref, skip_ref, o_ref):
    # x_ref/skip_ref: (C, S) blocks, channels on sublanes, spatial on lanes.
    # gamma_ref/beta_ref: (C, 1).
    x = x_ref[...].astype(jnp.float32)                      # (C, S)
    s = x.shape[1]
    inv_s = jnp.float32(1.0 / s)

    # Single-pass per-channel stats over the lane axis (== N*H*W), biased variance
    # (matches PyTorch BatchNorm2d normalization in training mode).
    s1 = jnp.sum(x, axis=-1, keepdims=True)                 # (C, 1)
    s2 = jnp.sum(x * x, axis=-1, keepdims=True)             # (C, 1)
    mean = s1 * inv_s
    var = s2 * inv_s - mean * mean
    inv_std = jax.lax.rsqrt(var + EPS)

    # Fold affine into one per-channel scale/shift -> single FMA per element.
    gamma = gamma_ref[...].astype(jnp.float32)              # (C, 1)
    beta = beta_ref[...].astype(jnp.float32)                # (C, 1)
    scale = gamma * inv_std                                 # (C, 1)
    shift = beta - mean * scale                             # (C, 1)

    # Load skip as late as possible to keep vreg pressure down.
    skip = skip_ref[...].astype(jnp.float32)                # (C, S)
    out = jnp.maximum(x * scale + shift + skip, 0.0)        # bn + add + relu
    o_ref[...] = out.astype(o_ref.dtype)


def bn_add_relu(x158, x151, gamma, beta):
    """x158 (BN input), x151 (residual): NCHW float32 arrays of identical shape."""
    N, C, H, W = x158.shape
    hw = H * W

    if N == 1:
        # NCHW with N=1 is already (C, H*W) contiguous: zero-copy reshape, no transpose.
        S = hw
        x_cs = x158.reshape(C, S)
        skip_cs = x151.reshape(C, S)
    else:
        # General-N fallback: gather each channel's (N, H*W) samples contiguously.
        S = N * hw
        x_cs = jnp.transpose(x158.reshape(N, C, hw), (1, 0, 2)).reshape(C, S)
        skip_cs = jnp.transpose(x151.reshape(N, C, hw), (1, 0, 2)).reshape(C, S)

    gamma_2d = gamma.reshape(C, 1)
    beta_2d = beta.reshape(C, 1)

    out_cs = pl.pallas_call(
        bn_add_relu_kernel,
        out_shape=jax.ShapeDtypeStruct((C, S), x158.dtype),
        in_specs=[
            pl.BlockSpec((C, S), lambda: (0, 0)),
            pl.BlockSpec((C, 1), lambda: (0, 0)),
            pl.BlockSpec((C, 1), lambda: (0, 0)),
            pl.BlockSpec((C, S), lambda: (0, 0)),
        ],
        out_specs=pl.BlockSpec((C, S), lambda: (0, 0)),
    )(x_cs, gamma_2d, beta_2d, skip_cs)

    if N == 1:
        return out_cs.reshape(N, C, H, W)
    return jnp.transpose(out_cs.reshape(C, N, hw), (1, 0, 2)).reshape(N, C, H, W)


if __name__ == "__main__":
    key = jax.random.PRNGKey(0)
    k1, k2, k3, k4 = jax.random.split(key, 4)

    N, C, H, W = 1, 400, 7, 7  # shapes implied by the module (BatchNorm2d(400), 7x7 maps)
    x158 = jax.random.normal(k1, (N, C, H, W), dtype=jnp.float32)  # BN input
    x151 = jax.random.normal(k2, (N, C, H, W), dtype=jnp.float32)  # residual input

    # BatchNorm2d affine params (PyTorch default init is ones/zeros; perturb to keep the
    # affine path non-trivial).
    gamma = 1.0 + 0.1 * jax.random.normal(k3, (C,), dtype=jnp.float32)
    beta = 0.1 * jax.random.normal(k4, (C,), dtype=jnp.float32)

    out = bn_add_relu(x158, x151, gamma, beta)
    jax.block_until_ready(out)

    # Pure-JAX reference check (training-mode BN forward + add + ReLU).
    mean = jnp.mean(x158, axis=(0, 2, 3), keepdims=True)
    var = jnp.mean((x158 - mean) ** 2, axis=(0, 2, 3), keepdims=True)
    ref = (x158 - mean) * jax.lax.rsqrt(var + EPS)
    ref = ref * gamma.reshape(1, C, 1, 1) + beta.reshape(1, C, 1, 1)
    ref = jnp.maximum(x151 + ref, 0.0)
    assert out.shape == (N, C, H, W)
    assert jnp.allclose(out, ref, atol=1e-4, rtol=1e-5), float(jnp.max(jnp.abs(out - ref)))

    print("KERNEL_OK")
</pallas_src>

<mosaic_0001>
module attributes {stable_mosaic.version = 11 : i64} {
  func.func @bn_add_relu_kernel(%arg0: memref<400x49xf32, #tpu.memory_space<vmem>>, %arg1: memref<400x1xf32, #tpu.memory_space<vmem>>, %arg2: memref<400x1xf32, #tpu.memory_space<vmem>>, %arg3: memref<400x49xf32, #tpu.memory_space<vmem>>, %arg4: memref<400x49xf32, #tpu.memory_space<vmem>>) attributes {dimension_semantics = [], scalar_prefetch = 0 : i64, scratch_operands = 0 : i64, tpu.core_type = #tpu.core_type<tc>} {
    %c0 = arith.constant 0 : index
    %c0_0 = arith.constant 0 : index
    %0 = vector.load %arg0[%c0, %c0_0] : memref<400x49xf32, #tpu.memory_space<vmem>>, vector<400x49xf32>
    %cst = arith.constant dense<0.000000e+00> : vector<400xf32>
    %1 = vector.multi_reduction <add>, %0, %cst [1] : vector<400x49xf32> to vector<400xf32>
    %2 = vector.shape_cast %1 : vector<400xf32> to vector<400x1xf32>
    %3 = arith.mulf %0, %0 : vector<400x49xf32>
    %cst_1 = arith.constant dense<0.000000e+00> : vector<400xf32>
    %4 = vector.multi_reduction <add>, %3, %cst_1 [1] : vector<400x49xf32> to vector<400xf32>
    %5 = vector.shape_cast %4 : vector<400xf32> to vector<400x1xf32>
    %cst_2 = arith.constant 0.0204081628 : f32
    %6 = vector.broadcast %cst_2 : f32 to vector<400x1xf32>
    %7 = arith.mulf %2, %6 : vector<400x1xf32>
    %cst_3 = arith.constant 0.0204081628 : f32
    %8 = vector.broadcast %cst_3 : f32 to vector<400x1xf32>
    %9 = arith.mulf %5, %8 : vector<400x1xf32>
    %10 = arith.mulf %7, %7 : vector<400x1xf32>
    %11 = arith.subf %9, %10 : vector<400x1xf32>
    %cst_4 = arith.constant 9.99999974E-6 : f32
    %12 = vector.broadcast %cst_4 : f32 to vector<400x1xf32>
    %13 = arith.addf %11, %12 : vector<400x1xf32>
    %14 = math.rsqrt %13 : vector<400x1xf32>
    %c0_5 = arith.constant 0 : index
    %c0_6 = arith.constant 0 : index
    %15 = vector.load %arg1[%c0_5, %c0_6] : memref<400x1xf32, #tpu.memory_space<vmem>>, vector<400x1xf32>
    %c0_7 = arith.constant 0 : index
    %c0_8 = arith.constant 0 : index
    %16 = vector.load %arg2[%c0_7, %c0_8] : memref<400x1xf32, #tpu.memory_space<vmem>>, vector<400x1xf32>
    %17 = arith.mulf %15, %14 : vector<400x1xf32>
    %18 = arith.mulf %7, %17 : vector<400x1xf32>
    %19 = arith.subf %16, %18 : vector<400x1xf32>
    %c0_9 = arith.constant 0 : index
    %c0_10 = arith.constant 0 : index
    %20 = vector.load %arg3[%c0_9, %c0_10] : memref<400x49xf32, #tpu.memory_space<vmem>>, vector<400x49xf32>
    %21 = vector.broadcast %17 : vector<400x1xf32> to vector<400x49xf32>
    %22 = arith.mulf %0, %21 : vector<400x49xf32>
    %23 = vector.broadcast %19 : vector<400x1xf32> to vector<400x49xf32>
    %24 = arith.addf %22, %23 : vector<400x49xf32>
    %25 = arith.addf %24, %20 : vector<400x49xf32>
    %cst_11 = arith.constant 0.000000e+00 : f32
    %26 = vector.broadcast %cst_11 : f32 to vector<400x49xf32>
    %27 = arith.maximumf %25, %26 : vector<400x49xf32>
    %c0_12 = arith.constant 0 : index
    %c0_13 = arith.constant 0 : index
    %28 = vector.load %arg4[%c0_12, %c0_13] : memref<400x49xf32, #tpu.memory_space<vmem>>, vector<400x49xf32>
    tpu.vector_store %arg4[%c0_12, %c0_13], %27 {strides = array<i32>} : memref<400x49xf32, #tpu.memory_space<vmem>>, vector<400x49xf32>,
    return
  }
}

</mosaic_0001>

<bundles_post_ra>
// kernel: tpu_custom_call.1
= control target key start
LH: loop header
LB: loop body
LE: loop exit
PB: predicated region body
PF: predicated region fallthrough
CT: control target
= control target key end

     0   :  { %vm67_vm0 = vcmask 400384   ;;  %s4001_s0 = inlined_call_operand.vmem [shape: f32[400,49], index: 0, kind: input, shape index: {}]   ;;  %s4002_s1 = inlined_call_operand.vmem [shape: f32[400,1], index: 1, kind: input, shape index: {}]   ;;  %s4003_s2 = inlined_call_operand.vmem [shape: f32[400,1], index: 2, kind: input, shape index: {}]   ;;  %s4004_s3 = inlined_call_operand.vmem [shape: f32[400,49], index: 3, kind: input, shape index: {}]   ;;  %s4005_s4 = inlined_call_operand.vmem [shape: f32[400,49], index: 4, kind: output, shape index: {}]  }
   0x1   :  { %v1954_v0 = vld [vmem:[%s4001_s0 + $0x10] sm:$0xff]  ;;  %v1959_v1 = vld [vmem:[%s4001_s0] sm:$0xff]  ;;  %v1964_v2 = vld [vmem:[%s4001_s0 + $0x18] sm:$0xff] }
   0x2   :  { %v74_v3 = vsel %vm67_vm0, %v1954_v0, 0.0  ;;  %v68_v4 = vsel %vm67_vm0, %v1959_v1, 0.0  ;;  %v1973_v5 = vld [vmem:[%s4001_s0 + $0x8] sm:$0xff]  ;;  %v77_v6 = vsel %vm67_vm0, %v1964_v2, 0.0  ;;  %v1987_v9 = vld [vmem:[%s4001_s0 + $0x20] sm:$0xff]  ;;  %v1996_v12 = vld [vmem:[%s4001_s0 + $0x38] sm:$0xff] }
   0x3   :  { %75 = vadd.xlane.f32.xlu1 %v74_v3  ;;  %69 = vadd.xlane.f32.xlu0 %v68_v4  ;;  %v71_v7 = vsel %vm67_vm0, %v1973_v5, 0.0  ;;  %v1982_v8 = vld [vmem:[%s4001_s0 + $0x28] sm:$0xff]  ;;  %v80_v11 = vsel %vm67_vm0, %v1987_v9, 0.0  ;;  %v2001_v13 = vld [vmem:[%s4001_s0 + $0x30] sm:$0xff]  ;;  %v89_v14 = vsel %vm67_vm0, %v1996_v12, 0.0  ;;  %v2015_v17 = vld [vmem:[%s4001_s0 + $0x40] sm:$0xff] }
   0x4   :  { %v83_v10 = vsel %vm67_vm0, %v1982_v8, 0.0  ;;  %v86_v15 = vsel %vm67_vm0, %v2001_v13, 0.0  ;;  %v2010_v16 = vld [vmem:[%s4001_s0 + $0x48] sm:$0xff]  ;;  %v92_v19 = vsel %vm67_vm0, %v2015_v17, 0.0  ;;  %v2024_v20 = vld [vmem:[%s4001_s0 + $0x58] sm:$0xff]  ;;  %v2029_v21 = vld [vmem:[%s4001_s0 + $0x50] sm:$0xff] }
   0x5   :  { %v95_v18 = vsel %vm67_vm0, %v2010_v16, 0.0  ;;  %v101_v22 = vsel %vm67_vm0, %v2024_v20, 0.0  ;;  %v98_v23 = vsel %vm67_vm0, %v2029_v21, 0.0  ;;  %v2038_v24 = vld [vmem:[%s4001_s0 + $0x68] sm:$0xff]  ;;  %v2043_v25 = vld [vmem:[%s4001_s0 + $0x60] sm:$0xff]  ;;  %v2052_v28 = vld [vmem:[%s4001_s0 + $0x78] sm:$0xff] }
   0x6   :  { %v107_v26 = vsel %vm67_vm0, %v2038_v24, 0.0  ;;  %v104_v27 = vsel %vm67_vm0, %v2043_v25, 0.0  ;;  %v2057_v29 = vld [vmem:[%s4001_s0 + $0x70] sm:$0xff]  ;;  %v113_v30 = vsel %vm67_vm0, %v2052_v28, 0.0  ;;  %v2066_v32 = vld [vmem:[%s4001_s0 + $0x88] sm:$0xff]  ;;  %v2071_v33 = vld [vmem:[%s4001_s0 + $0x80] sm:$0xff] }
   0x7   :  { %78 = vadd.xlane.f32.xlu1 %v77_v6  ;;  %72 = vadd.xlane.f32.xlu0 %v71_v7  ;;  %v110_v31 = vsel %vm67_vm0, %v2057_v29, 0.0  ;;  %v119_v34 = vsel %vm67_vm0, %v2066_v32, 0.0  ;;  %v116_v35 = vsel %vm67_vm0, %v2071_v33, 0.0  ;;  %v2080_v36 = vld [vmem:[%s4001_s0 + $0x98] sm:$0xff]  ;;  %v2085_v37 = vld [vmem:[%s4001_s0 + $0x90] sm:$0xff]  ;;  %v2094_v40 = vld [vmem:[%s4001_s0 + $0xa8] sm:$0xff] }
   0x8   :  { %v125_v38 = vsel %vm67_vm0, %v2080_v36, 0.0  ;;  %v122_v39 = vsel %vm67_vm0, %v2085_v37, 0.0  ;;  %v2099_v41 = vld [vmem:[%s4001_s0 + $0xa0] sm:$0xff]  ;;  %v131_v42 = vsel %vm67_vm0, %v2094_v40, 0.0  ;;  %v2108_v44 = vld [vmem:[%s4001_s0 + $0xb8] sm:$0xff]  ;;  %v2113_v45 = vld [vmem:[%s4001_s0 + $0xb0] sm:$0xff] }
   0x9   :  { %v128_v43 = vsel %vm67_vm0, %v2099_v41, 0.0  ;;  %v137_v46 = vsel %vm67_vm0, %v2108_v44, 0.0  ;;  %v134_v47 = vsel %vm67_vm0, %v2113_v45, 0.0  ;;  %v2122_v48 = vld [vmem:[%s4001_s0 + $0xc8] sm:$0xff]  ;;  %v2127_v49 = vld [vmem:[%s4001_s0 + $0xc0] sm:$0xff]  ;;  %v2136_v52 = vld [vmem:[%s4001_s0 + $0xd8] sm:$0xff] }
   0xa   :  { %v143_v50 = vsel %vm67_vm0, %v2122_v48, 0.0  ;;  %v140_v51 = vsel %vm67_vm0, %v2127_v49, 0.0  ;;  %v2141_v53 = vld [vmem:[%s4001_s0 + $0xd0] sm:$0xff]  ;;  %v149_v54 = vsel %vm67_vm0, %v2136_v52, 0.0  ;;  %v2150_v56 = vld [vmem:[%s4001_s0 + $0xe8] sm:$0xff]  ;;  %v2155_v57 = vld [vmem:[%s4001_s0 + $0xe0] sm:$0xff] }
   0xb   :  { %84 = vadd.xlane.f32.xlu1 %v83_v10  ;;  %81 = vadd.xlane.f32.xlu0 %v80_v11  ;;  %v146_v55 = vsel %vm67_vm0, %v2141_v53, 0.0  ;;  %v155_v58 = vsel %vm67_vm0, %v2150_v56, 0.0  ;;  %v152_v59 = vsel %vm67_vm0, %v2155_v57, 0.0  ;;  %v2164_v60 = vld [vmem:[%s4001_s0 + $0xf8] sm:$0xff]  ;;  %v2169_v61 = vld [vmem:[%s4001_s0 + $0xf0] sm:$0xff]  ;;  %v2178_v3 = vld [vmem:[%s4001_s0 + $0x108] sm:$0xff] }
   0xc   :  { %v161_v62 = vsel %vm67_vm0, %v2164_v60, 0.0  ;;  %v158_v63 = vsel %vm67_vm0, %v2169_v61, 0.0  ;;  %v2183_v4 = vld [vmem:[%s4001_s0 + $0x100] sm:$0xff]  ;;  %v167_v6 = vsel %vm67_vm0, %v2178_v3, 0.0  ;;  %v2192_v10 = vld [vmem:[%s4001_s0 + $0x118] sm:$0xff]  ;;  %v2197_v11 = vld [vmem:[%s4001_s0 + $0x110] sm:$0xff] }
   0xd   :  { %v164_v7 = vsel %vm67_vm0, %v2183_v4, 0.0 }
   0xf   :  { %90 = vadd.xlane.f32.xlu1 %v89_v14  ;;  %87 = vadd.xlane.f32.xlu0 %v86_v15  ;;  %v173_v14 = vsel %vm67_vm0, %v2192_v10, 0.0  ;;  %v170_v15 = vsel %vm67_vm0, %v2197_v11, 0.0 }
  0x13   :  { %96 = vadd.xlane.f32.xlu1 %v95_v18  ;;  %93 = vadd.xlane.f32.xlu0 %v92_v19  ;;  %v2206_v18 = vld [vmem:[%s4001_s0 + $0x128] sm:$0xff]  ;;  %v2211_v19 = vld [vmem:[%s4001_s0 + $0x120] sm:$0xff] }
  0x17   :  { %102 = vadd.xlane.f32.xlu1 %v101_v22  ;;  %99 = vadd.xlane.f32.xlu0 %v98_v23  ;;  %v179_v22 = vsel %vm67_vm0, %v2206_v18, 0.0  ;;  %v176_v23 = vsel %vm67_vm0, %v2211_v19, 0.0 }
  0x1b   :  { %108 = vadd.xlane.f32.xlu1 %v107_v26  ;;  %105 = vadd.xlane.f32.xlu0 %v104_v27  ;;  %v2220_v26 = vld [vmem:[%s4001_s0 + $0x138] sm:$0xff]  ;;  %v2225_v27 = vld [vmem:[%s4001_s0 + $0x130] sm:$0xff] }
  0x1f   :  { %114 = vadd.xlane.f32.xlu1 %v113_v30  ;;  %111 = vadd.xlane.f32.xlu0 %v110_v31  ;;  %v185_v30 = vsel %vm67_vm0, %v2220_v26, 0.0  ;;  %v182_v31 = vsel %vm67_vm0, %v2225_v27, 0.0 }
  0x23   :  { %120 = vadd.xlane.f32.xlu1 %v119_v34  ;;  %117 = vadd.xlane.f32.xlu0 %v116_v35  ;;  %v2234_v34 = vld [vmem:[%s4001_s0 + $0x148] sm:$0xff]  ;;  %v2239_v35 = vld [vmem:[%s4001_s0 + $0x140] sm:$0xff] }
  0x27   :  { %126 = vadd.xlane.f32.xlu1 %v125_v38  ;;  %123 = vadd.xlane.f32.xlu0 %v122_v39  ;;  %v191_v38 = vsel %vm67_vm0, %v2234_v34, 0.0  ;;  %v188_v39 = vsel %vm67_vm0, %v2239_v35, 0.0 }
  0x2b   :  { %132 = vadd.xlane.f32.xlu1 %v131_v42  ;;  %129 = vadd.xlane.f32.xlu0 %v128_v43  ;;  %v2248_v42 = vld [vmem:[%s4001_s0 + $0x158] sm:$0xff]  ;;  %v2253_v43 = vld [vmem:[%s4001_s0 + $0x150] sm:$0xff] }
  0x2f   :  { %138 = vadd.xlane.f32.xlu1 %v137_v46  ;;  %135 = vadd.xlane.f32.xlu0 %v134_v47  ;;  %v197_v46 = vsel %vm67_vm0, %v2248_v42, 0.0  ;;  %v194_v47 = vsel %vm67_vm0, %v2253_v43, 0.0 }
  0x33   :  { %144 = vadd.xlane.f32.xlu1 %v143_v50  ;;  %141 = vadd.xlane.f32.xlu0 %v140_v51  ;;  %v2262_v50 = vld [vmem:[%s4001_s0 + $0x168] sm:$0xff]  ;;  %v2267_v51 = vld [vmem:[%s4001_s0 + $0x160] sm:$0xff] }
  0x37   :  { %150 = vadd.xlane.f32.xlu1 %v149_v54  ;;  %147 = vadd.xlane.f32.xlu0 %v146_v55  ;;  %v203_v54 = vsel %vm67_vm0, %v2262_v50, 0.0  ;;  %v200_v55 = vsel %vm67_vm0, %v2267_v51, 0.0 }
  0x3b   :  { %156 = vadd.xlane.f32.xlu1 %v155_v58  ;;  %153 = vadd.xlane.f32.xlu0 %v152_v59  ;;  %v2276_v58 = vld [vmem:[%s4001_s0 + $0x178] sm:$0xff]  ;;  %v2281_v59 = vld [vmem:[%s4001_s0 + $0x170] sm:$0xff] }
  0x3f   :  { %162 = vadd.xlane.f32.xlu1 %v161_v62  ;;  %159 = vadd.xlane.f32.xlu0 %v158_v63  ;;  %v209_v62 = vsel %vm67_vm0, %v2276_v58, 0.0  ;;  %v206_v63 = vsel %vm67_vm0, %v2281_v59, 0.0 }
  0x43   :  { %168 = vadd.xlane.f32.xlu1 %v167_v6  ;;  %165 = vadd.xlane.f32.xlu0 %v164_v7  ;;  %v2290_v6 = vld [vmem:[%s4001_s0 + $0x188] sm:$0xff]  ;;  %v2295_v7 = vld [vmem:[%s4001_s0 + $0x180] sm:$0xff] }
  0x47   :  { %174 = vadd.xlane.f32.xlu1 %v173_v14  ;;  %171 = vadd.xlane.f32.xlu0 %v170_v15  ;;  %v215_v14 = vsel %vm67_vm0, %v2290_v6, 0.0  ;;  %v212_v15 = vsel %vm67_vm0, %v2295_v7, 0.0 }
  0x4b   :  { %180 = vadd.xlane.f32.xlu1 %v179_v22  ;;  %177 = vadd.xlane.f32.xlu0 %v176_v23  ;;  %v219_v22 = vmul.f32 %v1973_v5, %v1973_v5  ;;  %v218_v23 = vmul.f32 %v1959_v1, %v1959_v1  ;;  %v223_v1 = vmul.f32 %v1982_v8, %v1982_v8 }
  0x4f   :  { %186 = vadd.xlane.f32.xlu1 %v185_v30  ;;  %183 = vadd.xlane.f32.xlu0 %v182_v31  ;;  %v271_v30 = vsel %vm67_vm0, %v219_v22, 0.0  ;;  %v268_v31 = vsel %vm67_vm0, %v218_v23, 0.0  ;;  %v230_v23 = vmul.f32 %v2043_v25, %v2043_v25  ;;  %v235_v25 = vmul.f32 %v2066_v32, %v2066_v32 }
  0x53   :  { %192 = vadd.xlane.f32.xlu1 %v191_v38  ;;  %189 = vadd.xlane.f32.xlu0 %v188_v39  ;;  %v221_v38 = vmul.f32 %v1964_v2, %v1964_v2  ;;  %v220_v39 = vmul.f32 %v1954_v0, %v1954_v0  ;;  %v225_v0 = vmul.f32 %v1996_v12, %v1996_v12 }
  0x55   :  { %v274_v5 = vsel %vm67_vm0, %v220_v39, 0.0  ;;  %v234_v39 = vmul.f32 %v2071_v33, %v2071_v33  ;;  %v239_v33 = vmul.f32 %v2094_v40, %v2094_v40  ;;  %v240_v40 = vmul.f32 %v2113_v45, %v2113_v45 }
  0x57   :  { %198 = vadd.xlane.f32.xlu1 %v197_v46  ;;  %195 = vadd.xlane.f32.xlu0 %v194_v47  ;;  %v277_v46 = vsel %vm67_vm0, %v221_v38, 0.0  ;;  %v222_v47 = vmul.f32 %v1987_v9, %v1987_v9  ;;  %v227_v9 = vmul.f32 %v2010_v16, %v2010_v16 }
  0x59   :  { %v280_v2 = vsel %vm67_vm0, %v222_v47, 0.0  ;;  %v238_v47 = vmul.f32 %v2099_v41, %v2099_v41 }
  0x5b   :  { %204 = vadd.xlane.f32.xlu1 %v203_v54  ;;  %201 = vadd.xlane.f32.xlu0 %v200_v55  ;;  %v283_v54 = vsel %vm67_vm0, %v223_v1, 0.0  ;;  %v224_v55 = vmul.f32 %v2001_v13, %v2001_v13  ;;  %v229_v13 = vmul.f32 %v2024_v20, %v2024_v20  ;;  %v304_v20 = vsel %vm67_vm0, %v230_v23, 0.0 }
  0x5c   :  { %v247_v23 = vmul.f32 %v2150_v56, %v2150_v56 }
  0x5d   :  { %v286_v8 = vsel %vm67_vm0, %v224_v55, 0.0  ;;  %v301_v22 = vsel %vm67_vm0, %v229_v13, 0.0  ;;  %v241_v55 = vmul.f32 %v2108_v44, %v2108_v44 }
  0x5f   :  { %210 = vadd.xlane.f32.xlu1 %v209_v62  ;;  %207 = vadd.xlane.f32.xlu0 %v206_v63  ;;  %v289_v62 = vsel %vm67_vm0, %v225_v0, 0.0  ;;  %v226_v63 = vmul.f32 %v2015_v17, %v2015_v17  ;;  %v231_v17 = vmul.f32 %v2038_v24, %v2038_v24  ;;  %v328_v0 = vsel %vm67_vm0, %v238_v47, 0.0 }
  0x60   :  { %v255_v47 = vmul.f32 %v2206_v18, %v2206_v18 }
  0x61   :  { %v292_v12 = vsel %vm67_vm0, %v226_v63, 0.0  ;;  %v243_v63 = vmul.f32 %v2122_v48, %v2122_v48 }
  0x63   :  { %216 = vadd.xlane.f32.xlu1 %v215_v14  ;;  %213 = vadd.xlane.f32.xlu0 %v212_v15  ;;  %v295_v14 = vsel %vm67_vm0, %v227_v9, 0.0  ;;  %v228_v15 = vmul.f32 %v2029_v21, %v2029_v21  ;;  %v233_v21 = vmul.f32 %v2052_v28, %v2052_v28  ;;  %v316_v28 = vsel %vm67_vm0, %v234_v39, 0.0 }
  0x64   :  { %v334_v9 = vsel %vm67_vm0, %v240_v40, 0.0  ;;  %v251_v39 = vmul.f32 %v2178_v3, %v2178_v3  ;;  %v256_v40 = vmul.f32 %v2225_v27, %v2225_v27 }
  0x65   :  { %v298_v16 = vsel %vm67_vm0, %v228_v15, 0.0  ;;  %v313_v38 = vsel %vm67_vm0, %v233_v21, 0.0  ;;  %v245_v15 = vmul.f32 %v2136_v52, %v2136_v52 }
  0x67   :  { %272 = vadd.xlane.f32.xlu1 %v271_v30  ;;  %269 = vadd.xlane.f32.xlu0 %v268_v31  ;;  %v307_v30 = vsel %vm67_vm0, %v231_v17, 0.0  ;;  %v232_v31 = vmul.f32 %v2057_v29, %v2057_v29  ;;  %v237_v29 = vmul.f32 %v2080_v36, %v2080_v36 }
  0x69   :  { %v310_v24 = vsel %vm67_vm0, %v232_v31, 0.0  ;;  %v325_v1 = vsel %vm67_vm0, %v237_v29, 0.0  ;;  %v249_v31 = vmul.f32 %v2164_v60, %v2164_v60 }
  0x6b   :  { %278 = vadd.xlane.f32.xlu1 %v277_v46  ;;  %275 = vadd.xlane.f32.xlu0 %v274_v5  ;;  %v319_v46 = vsel %vm67_vm0, %v235_v25, 0.0  ;;  %v236_v5 = vmul.f32 %v2085_v37, %v2085_v37 }
  0x6d   :  { %v322_v32 = vsel %vm67_vm0, %v236_v5, 0.0  ;;  %v253_v5 = vmul.f32 %v2192_v10, %v2192_v10 }
  0x6f   :  { %284 = vadd.xlane.f32.xlu1 %v283_v54  ;;  %281 = vadd.xlane.f32.xlu0 %v280_v2  ;;  %v1925_v54 = vmov 0   ;;  %v331_v2 = vsel %vm67_vm0, %v239_v33, 0.0 }
  0x70   :  { %1774 = vset.pattern.permute.xlu1 %v1925_v54  ;;  %1773 = vset.pattern.permute.xlu0 %v1925_v54  ;;  %v254_v54 = vmul.f32 %v2211_v19, %v2211_v19 }
  0x73   :  { %290 = vadd.xlane.f32.xlu1 %v289_v62  ;;  %287 = vadd.xlane.f32.xlu0 %v286_v8  ;;  %v337_v8 = vsel %vm67_vm0, %v241_v55, 0.0  ;;  %v257_v55 = vmul.f32 %v2220_v26, %v2220_v26 }
  0x77   :  { %296 = vadd.xlane.f32.xlu1 %v295_v14  ;;  %293 = vadd.xlane.f32.xlu0 %v292_v12  ;;  %v242_v14 = vmul.f32 %v2127_v49, %v2127_v49  ;;  %v343_v12 = vsel %vm67_vm0, %v243_v63, 0.0  ;;  %v259_v63 = vmul.f32 %v2234_v34, %v2234_v34 }
  0x79   :  { %v340_v13 = vsel %vm67_vm0, %v242_v14, 0.0  ;;  %v258_v14 = vmul.f32 %v2239_v35, %v2239_v35 }
  0x7b   :  { %302 = vadd.xlane.f32.xlu1 %v301_v22  ;;  %299 = vadd.xlane.f32.xlu0 %v298_v16  ;;  %v244_v22 = vmul.f32 %v2141_v53, %v2141_v53  ;;  %v349_v16 = vsel %vm67_vm0, %v245_v15, 0.0  ;;  %v261_v15 = vmul.f32 %v2248_v42, %v2248_v42 }
  0x7d   :  { %v346_v17 = vsel %vm67_vm0, %v244_v22, 0.0  ;;  %v260_v22 = vmul.f32 %v2253_v43, %v2253_v43 }
  0x7f   :  { %308 = vadd.xlane.f32.xlu1 %v307_v30  ;;  %305 = vadd.xlane.f32.xlu0 %v304_v20  ;;  %v246_v30 = vmul.f32 %v2155_v57, %v2155_v57  ;;  %v355_v20 = vsel %vm67_vm0, %v247_v23, 0.0  ;;  %v263_v23 = vmul.f32 %v2262_v50, %v2262_v50 }
  0x81   :  { %v352_v21 = vsel %vm67_vm0, %v246_v30, 0.0  ;;  %v262_v30 = vmul.f32 %v2267_v51, %v2267_v51 }
  0x83   :  { %314 = vadd.xlane.f32.xlu1 %v313_v38  ;;  %311 = vadd.xlane.f32.xlu0 %v310_v24  ;;  %v248_v38 = vmul.f32 %v2169_v61, %v2169_v61  ;;  %v361_v24 = vsel %vm67_vm0, %v249_v31, 0.0  ;;  %v265_v31 = vmul.f32 %v2276_v58, %v2276_v58 }
  0x85   :  { %v358_v25 = vsel %vm67_vm0, %v248_v38, 0.0  ;;  %v264_v38 = vmul.f32 %v2281_v59, %v2281_v59 }
  0x87   :  { %320 = vadd.xlane.f32.xlu1 %v319_v46  ;;  %317 = vadd.xlane.f32.xlu0 %v316_v28  ;;  %v250_v46 = vmul.f32 %v2183_v4, %v2183_v4  ;;  %v367_v28 = vsel %vm67_vm0, %v251_v39, 0.0  ;;  %v267_v39 = vmul.f32 %v2290_v6, %v2290_v6 }
  0x89   :  { %v364_v29 = vsel %vm67_vm0, %v250_v46, 0.0  ;;  %v266_v46 = vmul.f32 %v2295_v7, %v2295_v7 }
  0x8b   :  { %326 = vadd.xlane.f32.xlu1 %v325_v1  ;;  %323 = vadd.xlane.f32.xlu0 %v322_v32  ;;  %v252_v1 = vmul.f32 %v2197_v11, %v2197_v11  ;;  %v373_v32 = vsel %vm67_vm0, %v253_v5, 0.0 }
  0x8c   :  { %v2365_v36 = vpop.xlane.xlu1 %75  ;;  %v2367_v37 = vpop.xlane.xlu0 %69 }
  0x8d   :  { %v370_v33 = vsel %vm67_vm0, %v252_v1, 0.0 }
  0x8f   :  { %332 = vadd.xlane.f32.xlu1 %v331_v2  ;;  %329 = vadd.xlane.f32.xlu0 %v328_v0  ;;  %v379_v2 = vsel %vm67_vm0, %v255_v47, 0.0  ;;  %v376_v0 = vsel %vm67_vm0, %v254_v54, 0.0 }
  0x90   :  { %v2375_v41 = vpop.xlane.xlu1 %78  ;;  %v2377_v62 = vpop.xlane.xlu0 %72 }
  0x93   :  { %338 = vadd.xlane.f32.xlu1 %v337_v8  ;;  %335 = vadd.xlane.f32.xlu0 %v334_v9  ;;  %v385_v8 = vsel %vm67_vm0, %v257_v55, 0.0  ;;  %v382_v9 = vsel %vm67_vm0, %v256_v40, 0.0 }
  0x94   :  { %v2385_v44 = vpop.xlane.xlu1 %84  ;;  %v2387_v45 = vpop.xlane.xlu0 %81 }
  0x97   :  { %344 = vadd.xlane.f32.xlu1 %v343_v12  ;;  %341 = vadd.xlane.f32.xlu0 %v340_v13  ;;  %v391_v12 = vsel %vm67_vm0, %v259_v63, 0.0  ;;  %v388_v13 = vsel %vm67_vm0, %v258_v14, 0.0 }
  0x98   :  { %v2395_v48 = vpop.xlane.xlu1 %90  ;;  %v2397_v49 = vpop.xlane.xlu0 %87 }
  0x9b   :  { %350 = vadd.xlane.f32.xlu1 %v349_v16  ;;  %347 = vadd.xlane.f32.xlu0 %v346_v17  ;;  %v397_v16 = vsel %vm67_vm0, %v261_v15, 0.0  ;;  %v394_v17 = vsel %vm67_vm0, %v260_v22, 0.0  ;;  %v2548_v15 = vmul.f32 0.020408163, %v2367_v37 }
  0x9c   :  { %v2405_v52 = vpop.xlane.xlu1 %96  ;;  %v2407_v53 = vpop.xlane.xlu0 %93 }
  0x9d   :  { %4050 = vst [vmem:[#allocation2_spill] sm:$0xff] %v2548_v15 }
  0x9f   :  { %356 = vadd.xlane.f32.xlu1 %v355_v20  ;;  %353 = vadd.xlane.f32.xlu0 %v352_v21  ;;  %v403_v20 = vsel %vm67_vm0, %v263_v23, 0.0  ;;  %v400_v21 = vsel %vm67_vm0, %v262_v30, 0.0  ;;  %v518_v23 = vmul.f32 %v2548_v15, %v2548_v15 }
  0xa0   :  { %v2415_v56 = vpop.xlane.xlu1 %102  ;;  %v2417_v57 = vpop.xlane.xlu0 %99 }
  0xa3   :  { %362 = vadd.xlane.f32.xlu1 %v361_v24  ;;  %359 = vadd.xlane.f32.xlu0 %v358_v25  ;;  %v409_v24 = vsel %vm67_vm0, %v265_v31, 0.0  ;;  %v406_v25 = vsel %vm67_vm0, %v264_v38, 0.0 }
  0xa4   :  { %v2425_v60 = vpop.xlane.xlu1 %108  ;;  %v2427_v61 = vpop.xlane.xlu0 %105 }
  0xa7   :  { %368 = vadd.xlane.f32.xlu1 %v367_v28  ;;  %365 = vadd.xlane.f32.xlu0 %v364_v29  ;;  %v415_v28 = vsel %vm67_vm0, %v267_v39, 0.0  ;;  %v412_v29 = vsel %vm67_vm0, %v266_v46, 0.0 }
  0xa8   :  { %v2435_v3 = vpop.xlane.xlu1 %114  ;;  %v2437_v4 = vpop.xlane.xlu0 %111 }
  0xab   :  { %374 = vadd.xlane.f32.xlu1 %v373_v32  ;;  %371 = vadd.xlane.f32.xlu0 %v370_v33 }
  0xac   :  { %v2445_v10 = vpop.xlane.xlu1 %120  ;;  %v2447_v11 = vpop.xlane.xlu0 %117 }
  0xaf   :  { %380 = vadd.xlane.f32.xlu1 %v379_v2  ;;  %377 = vadd.xlane.f32.xlu0 %v376_v0 }
  0xb0   :  { %v2455_v18 = vpop.xlane.xlu1 %126  ;;  %v2457_v19 = vpop.xlane.xlu0 %123 }
  0xb3   :  { %386 = vadd.xlane.f32.xlu1 %v385_v8  ;;  %383 = vadd.xlane.f32.xlu0 %v382_v9 }
  0xb4   :  { %v2465_v26 = vpop.xlane.xlu1 %132  ;;  %v2467_v27 = vpop.xlane.xlu0 %129 }
  0xb7   :  { %392 = vadd.xlane.f32.xlu1 %v391_v12  ;;  %389 = vadd.xlane.f32.xlu0 %v388_v13 }
  0xb8   :  { %v2475_v34 = vpop.xlane.xlu1 %138  ;;  %v2477_v35 = vpop.xlane.xlu0 %135 }
  0xbb   :  { %398 = vadd.xlane.f32.xlu1 %v397_v16  ;;  %395 = vadd.xlane.f32.xlu0 %v394_v17  ;;  %v2555_v17 = vmul.f32 0.020408163, %v2377_v62  ;;  %v2568_v62 = vmul.f32 0.020408163, %v2387_v45 }
  0xbc   :  { %v2485_v42 = vpop.xlane.xlu1 %144  ;;  %v2487_v43 = vpop.xlane.xlu0 %141 }
  0xbd   :  { %4052 = vst [vmem:[#allocation4_spill] sm:$0xff] %v2555_v17  ;;  %v519_v31 = vmul.f32 %v2555_v17, %v2555_v17  ;;  %4055 = vst [vmem:[#allocation7_spill] sm:$0xff] %v2568_v62 }
  0xbf   :  { %404 = vadd.xlane.f32.xlu1 %v403_v20  ;;  %401 = vadd.xlane.f32.xlu0 %v400_v21  ;;  %v2560_v21 = vmul.f32 0.020408163, %v2375_v41 }
  0xc0   :  { %v2495_v50 = vpop.xlane.xlu1 %150  ;;  %v2497_v51 = vpop.xlane.xlu0 %147 }
  0xc1   :  { %4053 = vst [vmem:[#allocation5_spill] sm:$0xff] %v2560_v21 }
  0xc3   :  { %410 = vadd.xlane.f32.xlu1 %v409_v24  ;;  %407 = vadd.xlane.f32.xlu0 %v406_v25  ;;  %v2565_v24 = vmul.f32 0.020408163, %v2365_v36 }
  0xc4   :  { %v2505_v58 = vpop.xlane.xlu1 %156  ;;  %v2507_v59 = vpop.xlane.xlu0 %153 }
  0xc5   :  { %4054 = vst [vmem:[#allocation6_spill] sm:$0xff] %v2565_v24 }
  0xc7   :  { %416 = vadd.xlane.f32.xlu1 %v415_v28  ;;  %413 = vadd.xlane.f32.xlu0 %v412_v29  ;;  %v521_v29 = vmul.f32 %v2560_v21, %v2560_v21 }
  0xc8   :  { %v2511_v5 = vpop.xlane.xlu1 %162  ;;  %v2513_v1 = vpop.xlane.xlu0 %159 }
  0xcc   :  { %v2515_v6 = vpop.xlane.xlu1 %168  ;;  %v2517_v32 = vpop.xlane.xlu0 %165 }
  0xd0   :  { %v2519_v7 = vpop.xlane.xlu1 %174  ;;  %v2521_v33 = vpop.xlane.xlu0 %171 }
  0xd4   :  { %v2523_v47 = vpop.xlane.xlu1 %180  ;;  %v2525_v54 = vpop.xlane.xlu0 %177 }
  0xd8   :  { %v2527_v2 = vpop.xlane.xlu1 %186  ;;  %v2529_v0 = vpop.xlane.xlu0 %183 }
  0xdc   :  { %v2531_v55 = vpop.xlane.xlu1 %192  ;;  %v2533_v40 = vpop.xlane.xlu0 %189 }
  0xe0   :  { %v2535_v8 = vpop.xlane.xlu1 %198  ;;  %v2537_v9 = vpop.xlane.xlu0 %195 }
  0xe4   :  { %v2539_v63 = vpop.xlane.xlu1 %204  ;;  %v2541_v14 = vpop.xlane.xlu0 %201 }
  0xe8   :  { %v2543_v12 = vpop.xlane.xlu1 %210  ;;  %v2545_v13 = vpop.xlane.xlu0 %207 }
  0xec   :  { %v2550_v22 = vpop.xlane.xlu1 %216  ;;  %v2552_v16 = vpop.xlane.xlu0 %213 }
  0xed   :  { %4051 = vst [vmem:[#allocation3_spill] sm:$0xff] %v2552_v16 }
  0xf0   :  { %v273_v30 = vpop.xlane.xlu1 %272  ;;  %v270_v20 = vpop.xlane.xlu0 %269 }
  0xf1   :  { %v469_v37 = vmul.f32 0.020408163, %v273_v30  ;;  %v468_v38 = vmul.f32 0.020408163, %v270_v20  ;;  %v520_v30 = vmul.f32 %v2565_v24, %v2565_v24  ;;  %v2618_v24 = vmul.f32 0.020408163, %v2417_v57 }
  0xf3   :  { %v569_v25 = vsub.f32 %v469_v37, %v519_v31  ;;  %v568_v39 = vsub.f32 %v468_v38, %v518_v23  ;;  %v2575_v31 = vmul.f32 0.020408163, %v2385_v44  ;;  %v522_v38 = vmul.f32 %v2568_v62, %v2568_v62  ;;  %4060 = vst [vmem:[#allocation12_spill] sm:$0xff] %v2618_v24 }
  0xf4   :  { %v279_v46 = vpop.xlane.xlu1 %278  ;;  %v276_v28 = vpop.xlane.xlu0 %275 }
  0xf5   :  { %v619_v41 = vadd.f32 1e-05, %v569_v25  ;;  %v618_v15 = vadd.f32 1e-05, %v568_v39  ;;  %v471_v16 = vmul.f32 0.020408163, %v279_v46 }
  0xf6   :  { %v470_v20 = vmul.f32 0.020408163, %v276_v28  ;;  %v523_v28 = vmul.f32 %v2575_v31, %v2575_v31 }
  0xf7   :  { %1775 = vrsqrt.f32 %v619_v41  ;;  %v571_v36 = vsub.f32 %v471_v16, %v521_v29  ;;  %v2582_v16 = vmul.f32 0.020408163, %v2397_v49  ;;  %v2585_v29 = vmul.f32 0.020408163, %v2405_v52 }
  0xf8   :  { %1777 = vrsqrt.f32 %v618_v15  ;;  %v570_v45 = vsub.f32 %v470_v20, %v520_v30  ;;  %v285_v23 = vpop.xlane.xlu1 %284  ;;  %v282_v37 = vpop.xlane.xlu0 %281  ;;  %v2596_v49 = vmul.f32 0.020408163, %v2415_v56  ;;  %v718_v56 = vld [vmem:[%s4002_s1] sm:$0xff] }
  0xf9   :  { %v472_v21 = vmul.f32 0.020408163, %v282_v37  ;;  %v621_v25 = vadd.f32 1e-05, %v571_v36  ;;  %v473_v46 = vmul.f32 0.020408163, %v285_v23  ;;  %v527_v52 = vmul.f32 %v2585_v29, %v2585_v29 }
  0xfa   :  { %v620_v39 = vadd.f32 1e-05, %v570_v45  ;;  %4056 = vst [vmem:[#allocation8_spill] sm:$0xff] %v2582_v16  ;;  %4057 = vst [vmem:[#allocation9_spill] sm:$0xff] %v2585_v29  ;;  %v2588_v36 = vmul.f32 0.020408163, %v2395_v48 }
  0xfb   :  { %v572_v17 = vsub.f32 %v472_v21, %v522_v38  ;;  %v573_v41 = vsub.f32 %v473_v46, %v523_v28  ;;  %v524_v21 = vmul.f32 %v2582_v16, %v2582_v16  ;;  %v2593_v45 = vmul.f32 0.020408163, %v2407_v53  ;;  %4059 = vst [vmem:[#allocation11_spill] sm:$0xff] %v2596_v49 }
  0xfc   :  { %1779 = vrsqrt.f32 %v620_v39  ;;  %v291_v44 = vpop.xlane.xlu1 %290  ;;  %v288_v15 = vpop.xlane.xlu0 %287  ;;  %v719_v39 = vld [vmem:[%s4002_s1 + $0x8] sm:$0xff]  ;;  %v525_v53 = vmul.f32 %v2588_v36, %v2588_v36 }
  0xfd   :  { %1781 = vrsqrt.f32 %v621_v25  ;;  %v622_v30 = vadd.f32 1e-05, %v572_v17  ;;  %v474_v20 = vmul.f32 0.020408163, %v288_v15  ;;  %4058 = vst [vmem:[#allocation10_spill] sm:$0xff] %v2593_v45  ;;  %v529_v15 = vmul.f32 %v2596_v49, %v2596_v49 }
  0xfe   :  { %v475_v38 = vmul.f32 0.020408163, %v291_v44  ;;  %v623_v25 = vadd.f32 1e-05, %v573_v41  ;;  %v526_v44 = vmul.f32 %v2593_v45, %v2593_v45  ;;  %v2613_v41 = vmul.f32 0.020408163, %v2425_v60 }
  0xff   :  { %1783 = vrsqrt.f32 %v622_v30  ;;  %v574_v48 = vsub.f32 %v474_v20, %v524_v21  ;;  %v720_v60 = vld [vmem:[%s4002_s1 + $0x10] sm:$0xff] }
 0x100   :  { %v297_v23 = vpop.xlane.xlu1 %296  ;;  %v294_v37 = vpop.xlane.xlu0 %293  ;;  %v575_v16 = vsub.f32 %v475_v38, %v525_v53  ;;  %1785 = vrsqrt.f32 %v623_v25  ;;  %v531_v53 = vmul.f32 %v2613_v41, %v2613_v41 }
 0x101   :  { %v477_v17 = vmul.f32 0.020408163, %v297_v23  ;;  %v476_v30 = vmul.f32 0.020408163, %v294_v37  ;;  %v624_v45 = vadd.f32 1e-05, %v574_v48 }
 0x102   :  { %v2627_v37 = vmul.f32 0.020408163, %v2435_v3 }
 0x103   :  { %v577_v46 = vsub.f32 %v477_v17, %v527_v52  ;;  %v576_v38 = vsub.f32 %v476_v30, %v526_v44  ;;  %v2637_v44 = vmul.f32 0.020408163, %v2427_v61 }
 0x104   :  { %v1776_v28 = vpop.eup %1775  ;;  %v303_v20 = vpop.xlane.xlu1 %302 }
 0x105   :  { %v300_v21 = vpop.xlane.xlu0 %299  ;;  %v1778_v23 = vpop.eup %1777  ;;  %v627_v52 = vadd.f32 1e-05, %v577_v46  ;;  %v479_v17 = vmul.f32 0.020408163, %v303_v20  ;;  %v2615_v62 = vmul.f32 %v1776_v28, %v719_v39  ;;  %v625_v46 = vadd.f32 1e-05, %v575_v16 }
 0x106   :  { %v2620_v29 = vmul.f32 %v1778_v23, %v718_v56  ;;  %v478_v39 = vmul.f32 0.020408163, %v300_v21  ;;  %4061 = vst [vmem:[#allocation13_spill] sm:$0xff] %v2637_v44  ;;  %v721_v21 = vld [vmem:[%s4002_s1 + $0x18] sm:$0xff]  ;;  %v533_v16 = vmul.f32 %v2627_v37, %v2627_v37  ;;  %v626_v23 = vadd.f32 1e-05, %v576_v38 }
 0x107   :  { %1787 = vrsqrt.f32 %v627_v52  ;;  %v579_v49 = vsub.f32 %v479_v17, %v529_v15  ;;  %1025 = vperm.xlu1 %1774, %v2615_v62   ;;  %v528_v15 = vmul.f32 %v2618_v24, %v2618_v24  ;;  %v722_v38 = vld [vmem:[%s4002_s1 + $0x20] sm:$0xff] }
 0x108   :  { %1020 = vperm.xlu0 %1773, %v2620_v29   ;;  %v309_v57 = vpop.xlane.xlu1 %308  ;;  %1789 = vrsqrt.f32 %v624_v45 }
 0x109   :  { %v306_v25 = vpop.xlane.xlu0 %305  ;;  %v1780_v48 = vpop.eup %1779  ;;  %v629_v56 = vadd.f32 1e-05, %v579_v49  ;;  %v481_v28 = vmul.f32 0.020408163, %v309_v57  ;;  %v2645_v49 = vmul.f32 0.020408163, %v2445_v10  ;;  %v578_v45 = vsub.f32 %v478_v39, %v528_v15 }
 0x10a   :  { %v2634_v20 = vmul.f32 %v1780_v48, %v720_v60  ;;  %v1782_v3 = vpop.eup %1781  ;;  %v480_v60 = vmul.f32 0.020408163, %v306_v25  ;;  %v2661_v25 = vmul.f32 0.020408163, %v2455_v18 }
 0x10b   :  { %1791 = vrsqrt.f32 %v629_v56  ;;  %v581_v30 = vsub.f32 %v481_v28, %v531_v53  ;;  %4062 = vst [vmem:[#allocation14_spill] sm:$0xff] %v2645_v49  ;;  %v2648_v48 = vmul.f32 %v1782_v3, %v721_v21  ;;  %v530_v56 = vmul.f32 %v2637_v44, %v2637_v44 }
 0x10c   :  { %1030 = vperm.xlu1 %1774, %v2634_v20   ;;  %v315_v52 = vpop.xlane.xlu1 %314  ;;  %1793 = vrsqrt.f32 %v625_v46  ;;  %v1784_v53 = vpop.eup %1783  ;;  %v2653_v28 = vmul.f32 0.020408163, %v2437_v4  ;;  %v535_v39 = vmul.f32 %v2645_v49, %v2645_v49  ;;  %4064 = vst [vmem:[#allocation16_spill] sm:$0xff] %v2661_v25  ;;  %v628_v46 = vadd.f32 1e-05, %v578_v45 }
 0x10d   :  { %v312_v17 = vpop.xlane.xlu0 %311  ;;  %v631_v61 = vadd.f32 1e-05, %v581_v30  ;;  %v483_v57 = vmul.f32 0.020408163, %v315_v52  ;;  %v580_v4 = vsub.f32 %v480_v60, %v530_v56  ;;  %v2664_v52 = vmul.f32 %v1784_v53, %v722_v38 }
 0x10e   :  { %4063 = vst [vmem:[#allocation15_spill] sm:$0xff] %v2653_v28  ;;  %v532_v18 = vmul.f32 %v2653_v28, %v2653_v28  ;;  %v2675_v56 = vmul.f32 0.020408163, %v2447_v11  ;;  %v2680_v53 = vmul.f32 0.020408163, %v2465_v26 }
 0x10f   :  { %1795 = vrsqrt.f32 %v631_v61  ;;  %v583_v10 = vsub.f32 %v483_v57, %v533_v16  ;;  %v482_v16 = vmul.f32 0.020408163, %v312_v17  ;;  %v727_v61 = vld [vmem:[%s4002_s1 + $0x48] sm:$0xff]  ;;  %v1786_v57 = vpop.eup %1785  ;;  %v537_v17 = vmul.f32 %v2661_v25, %v2661_v25  ;;  %v729_v25 = vld [vmem:[%s4002_s1 + $0x58] sm:$0xff] }
 0x110   :  { %1035 = vperm.xlu1 %1774, %v2648_v48   ;;  %v321_v15 = vpop.xlane.xlu1 %320  ;;  %1797 = vrsqrt.f32 %v626_v23  ;;  %v723_v23 = vld [vmem:[%s4002_s1 + $0x28] sm:$0xff]  ;;  %4065 = vst [vmem:[#allocation17_spill] sm:$0xff] %v2675_v56  ;;  %4066 = vst [vmem:[#allocation18_spill] sm:$0xff] %v2680_v53 }
 0x111   :  { %v318_v3 = vpop.xlane.xlu0 %317  ;;  %v633_v30 = vadd.f32 1e-05, %v583_v10  ;;  %v485_v21 = vmul.f32 0.020408163, %v321_v15  ;;  %v582_v28 = vsub.f32 %v482_v16, %v532_v18  ;;  %v2685_v11 = vmul.f32 %v1786_v57, %v723_v23 }
 0x112   :  { %v484_v44 = vmul.f32 0.020408163, %v318_v3  ;;  %v534_v16 = vmul.f32 %v2675_v56, %v2675_v56  ;;  %v2697_v3 = vmul.f32 0.020408163, %v2457_v19  ;;  %v2702_v57 = vmul.f32 0.020408163, %v2475_v34 }
 0x113   :  { %1799 = vrsqrt.f32 %v633_v30  ;;  %v585_v45 = vsub.f32 %v485_v21, %v535_v39  ;;  %v630_v39 = vadd.f32 1e-05, %v580_v4  ;;  %v724_v4 = vld [vmem:[%s4002_s1 + $0x30] sm:$0xff]  ;;  %v731_v34 = vld [vmem:[%s4002_s1 + $0x68] sm:$0xff] }
 0x114   :  { %v1788_v60 = vpop.eup %1787  ;;  %1801 = vrsqrt.f32 %v628_v46  ;;  %1040 = vperm.xlu1 %1774, %v2664_v52   ;;  %v327_v10 = vpop.xlane.xlu1 %326  ;;  %4067 = vst [vmem:[#allocation19_spill] sm:$0xff] %v2697_v3  ;;  %4068 = vst [vmem:[#allocation20_spill] sm:$0xff] %v2702_v57  ;;  %v584_v56 = vsub.f32 %v484_v44, %v534_v16  ;;  %v2719_v44 = vmul.f32 0.020408163, %v2467_v27 }
 0x115   :  { %v324_v38 = vpop.xlane.xlu0 %323  ;;  %v635_v15 = vadd.f32 1e-05, %v585_v45  ;;  %v487_v30 = vmul.f32 0.020408163, %v327_v10  ;;  %v2683_v21 = vmul.f32 %v1788_v60, %v727_v61  ;;  %v1790_v26 = vpop.eup %1789  ;;  %v539_v61 = vmul.f32 %v2680_v53, %v2680_v53  ;;  %v725_v53 = vld [vmem:[%s4002_s1 + $0x38] sm:$0xff] }
 0x116   :  { %v486_v19 = vmul.f32 0.020408163, %v324_v38  ;;  %v2707_v24 = vmul.f32 %v1790_v26, %v724_v4  ;;  %4069 = vst [vmem:[#allocation21_spill] sm:$0xff] %v2719_v44  ;;  %v541_v38 = vmul.f32 %v2702_v57, %v2702_v57  ;;  %v2724_v26 = vmul.f32 0.020408163, %v2485_v42  ;;  %v733_v42 = vld [vmem:[%s4002_s1 + $0x78] sm:$0xff] }
 0x117   :  { %1803 = vrsqrt.f32 %v635_v15  ;;  %v587_v46 = vsub.f32 %v487_v30, %v537_v17  ;;  %1065 = vperm.xlu0 %1773, %v2683_v21   ;;  %v632_v30 = vadd.f32 1e-05, %v582_v28  ;;  %v536_v28 = vmul.f32 %v2697_v3, %v2697_v3  ;;  %v726_v57 = vld [vmem:[%s4002_s1 + $0x40] sm:$0xff] }
 0x118   :  { %v1792_v45 = vpop.eup %1791  ;;  %1045 = vperm.xlu1 %1774, %v2685_v11   ;;  %v333_v18 = vpop.xlane.xlu1 %332  ;;  %1805 = vrsqrt.f32 %v630_v39  ;;  %4070 = vst [vmem:[#allocation22_spill] sm:$0xff] %v2724_v26  ;;  %v634_v27 = vadd.f32 1e-05, %v584_v56  ;;  %v2741_v56 = vmul.f32 0.020408163, %v2477_v35 }
 0x119   :  { %v330_v23 = vpop.xlane.xlu0 %329  ;;  %v637_v60 = vadd.f32 1e-05, %v587_v46  ;;  %v489_v17 = vmul.f32 0.020408163, %v333_v18  ;;  %v2705_v10 = vmul.f32 %v1792_v45, %v729_v25  ;;  %v1794_v15 = vpop.eup %1793 }
 0x11a   :  { %v2729_v18 = vmul.f32 %v1794_v15, %v725_v53  ;;  %v488_v3 = vmul.f32 0.020408163, %v330_v23  ;;  %v538_v53 = vmul.f32 %v2719_v44, %v2719_v44  ;;  %4071 = vst [vmem:[#allocation23_spill] sm:$0xff] %v2741_v56  ;;  %v543_v23 = vmul.f32 %v2724_v26, %v2724_v26  ;;  %v728_v26 = vld [vmem:[%s4002_s1 + $0x50] sm:$0xff] }
 0x11b   :  { %1807 = vrsqrt.f32 %v637_v60  ;;  %v589_v39 = vsub.f32 %v489_v17, %v539_v61  ;;  %1075 = vperm.xlu0 %1773, %v2705_v10   ;;  %v586_v17 = vsub.f32 %v486_v19, %v536_v28  ;;  %v2746_v15 = vmul.f32 0.020408163, %v2495_v50  ;;  %v735_v50 = vld [vmem:[%s4002_s1 + $0x88] sm:$0xff] }
 0x11c   :  { %v1796_v25 = vpop.eup %1795  ;;  %1050 = vperm.xlu1 %1774, %v2707_v24   ;;  %v339_v46 = vpop.xlane.xlu1 %338  ;;  %1809 = vrsqrt.f32 %v632_v30 }
 0x11d   :  { %v336_v4 = vpop.xlane.xlu0 %335  ;;  %v639_v45 = vadd.f32 1e-05, %v589_v39  ;;  %v491_v16 = vmul.f32 0.020408163, %v339_v46  ;;  %v2727_v61 = vmul.f32 %v1796_v25, %v731_v34  ;;  %v1798_v60 = vpop.eup %1797  ;;  %4072 = vst [vmem:[#allocation24_spill] sm:$0xff] %v2746_v15 }
 0x11e   :  { %v636_v35 = vadd.f32 1e-05, %v586_v17  ;;  %v490_v44 = vmul.f32 0.020408163, %v336_v4  ;;  %v2768_v4 = vmul.f32 0.020408163, %v2505_v58 }
 0x11f   :  { %1811 = vrsqrt.f32 %v639_v45  ;;  %v591_v39 = vsub.f32 %v491_v16, %v541_v38  ;;  %1085 = vperm.xlu0 %1773, %v2727_v61   ;;  %v2751_v45 = vmul.f32 %v1798_v60, %v726_v57  ;;  %v588_v16 = vsub.f32 %v488_v3, %v538_v53  ;;  %v737_v58 = vld [vmem:[%s4002_s1 + $0x98] sm:$0xff] }
 0x120   :  { %v1800_v34 = vpop.eup %1799  ;;  %1055 = vperm.xlu1 %1774, %v2729_v18   ;;  %v345_v30 = vpop.xlane.xlu1 %344  ;;  %1813 = vrsqrt.f32 %v634_v27  ;;  %v540_v57 = vmul.f32 %v2741_v56, %v2741_v56  ;;  %v2763_v60 = vmul.f32 0.020408163, %v2487_v43  ;;  %v545_v3 = vmul.f32 %v2746_v15, %v2746_v15  ;;  %4074 = vst [vmem:[#allocation26_spill] sm:$0xff] %v2768_v4  ;;  %v730_v56 = vld [vmem:[%s4002_s1 + $0x60] sm:$0xff] }
 0x121   :  { %v342_v19 = vpop.xlane.xlu0 %341  ;;  %v1802_v25 = vpop.eup %1801  ;;  %v641_v28 = vadd.f32 1e-05, %v591_v39  ;;  %v493_v38 = vmul.f32 0.020408163, %v345_v30  ;;  %v2749_v46 = vmul.f32 %v1800_v34, %v733_v42  ;;  %v638_v43 = vadd.f32 1e-05, %v588_v16 }
 0x122   :  { %4073 = vst [vmem:[#allocation25_spill] sm:$0xff] %v2763_v60 }
 0x123   :  { %1815 = vrsqrt.f32 %v641_v28  ;;  %v593_v49 = vsub.f32 %v493_v38, %v543_v23  ;;  %1095 = vperm.xlu0 %1773, %v2749_v46   ;;  %v2773_v23 = vmul.f32 %v1802_v25, %v728_v26  ;;  %v590_v28 = vsub.f32 %v490_v44, %v540_v57 }
 0x124   :  { %v1804_v42 = vpop.eup %1803  ;;  %1060 = vperm.xlu1 %1774, %v2751_v45   ;;  %v351_v27 = vpop.xlane.xlu1 %350  ;;  %1817 = vrsqrt.f32 %v636_v35  ;;  %v492_v38 = vmul.f32 0.020408163, %v342_v19  ;;  %v542_v44 = vmul.f32 %v2763_v60, %v2763_v60  ;;  %v547_v19 = vmul.f32 %v2768_v4, %v2768_v4 }
 0x125   :  { %v348_v17 = vpop.xlane.xlu0 %347  ;;  %v643_v39 = vadd.f32 1e-05, %v593_v49  ;;  %v495_v34 = vmul.f32 0.020408163, %v351_v27  ;;  %v2771_v53 = vmul.f32 %v1804_v42, %v735_v50  ;;  %v1806_v30 = vpop.eup %1805  ;;  %v2782_v49 = vmul.f32 0.020408163, %v2497_v51 }
 0x126   :  { %v2790_v25 = vmul.f32 0.020408163, %v2507_v59  ;;  %v2793_v35 = vmul.f32 0.020408163, %v2511_v5  ;;  %v2798_v27 = vmul.f32 %v1806_v30, %v730_v56  ;;  %v494_v60 = vmul.f32 0.020408163, %v348_v17 }
 0x127   :  { %4075 = vst [vmem:[#allocation27_spill] sm:$0xff] %v2782_v49  ;;  %1819 = vrsqrt.f32 %v643_v39  ;;  %v595_v50 = vsub.f32 %v495_v34, %v545_v3  ;;  %1105 = vperm.xlu0 %1773, %v2771_v53   ;;  %v640_v39 = vadd.f32 1e-05, %v590_v28  ;;  %v592_v34 = vsub.f32 %v492_v38, %v542_v44  ;;  %v739_v59 = vld [vmem:[%s4002_s1 + $0xa8] sm:$0xff]  ;;  %v732_v56 = vld [vmem:[%s4002_s1 + $0x70] sm:$0xff] }
 0x128   :  { %v1808_v26 = vpop.eup %1807  ;;  %4076 = vst [vmem:[#allocation28_spill] sm:$0xff] %v2790_v25  ;;  %1070 = vperm.xlu1 %1774, %v2773_v23   ;;  %v357_v51 = vpop.xlane.xlu1 %356  ;;  %1821 = vrsqrt.f32 %v638_v43  ;;  %v544_v4 = vmul.f32 %v2782_v49, %v2782_v49  ;;  %v546_v17 = vmul.f32 %v2790_v25, %v2790_v25  ;;  %v2812_v43 = vmul.f32 0.020408163, %v2513_v1 }
 0x129   :  { %v354_v16 = vpop.xlane.xlu0 %353  ;;  %v645_v42 = vadd.f32 1e-05, %v595_v50  ;;  %v497_v57 = vmul.f32 0.020408163, %v357_v51  ;;  %v2796_v3 = vmul.f32 %v1808_v26, %v737_v58  ;;  %v1810_v5 = vpop.eup %1809  ;;  %v2815_v28 = vmul.f32 0.020408163, %v2515_v6 }
 0x12a   :  { %4077 = vst [vmem:[#allocation29_spill] sm:$0xff] %v2812_v43  ;;  %v496_v38 = vmul.f32 0.020408163, %v354_v16  ;;  %v549_v26 = vmul.f32 %v2793_v35, %v2793_v35  ;;  %v2822_v1 = vmul.f32 %v1810_v5, %v732_v56  ;;  %v741_v6 = vld [vmem:[%s4002_s1 + $0xb8] sm:$0xff] }
 0x12b   :  { %1823 = vrsqrt.f32 %v645_v42  ;;  %v597_v15 = vsub.f32 %v497_v57, %v547_v19  ;;  %1115 = vperm.xlu0 %1773, %v2796_v3   ;;  %4078 = vst [vmem:[#allocation30_spill] sm:$0xff] %v2815_v28  ;;  %v642_v42 = vadd.f32 1e-05, %v592_v34  ;;  %v594_v57 = vsub.f32 %v494_v60, %v544_v4 }
 0x12c   :  { %v1812_v30 = vpop.eup %1811  ;;  %1080 = vperm.xlu1 %1774, %v2798_v27   ;;  %v363_v58 = vpop.xlane.xlu1 %362  ;;  %1825 = vrsqrt.f32 %v640_v39  ;;  %v548_v39 = vmul.f32 %v2812_v43, %v2812_v43  ;;  %v551_v60 = vmul.f32 %v2815_v28, %v2815_v28  ;;  %v596_v4 = vsub.f32 %v496_v38, %v546_v17  ;;  %v743_v17 = vld [vmem:[%s4002_s1 + $0xc8] sm:$0xff] }
 0x12d   :  { %v360_v50 = vpop.xlane.xlu0 %359  ;;  %v647_v44 = vadd.f32 1e-05, %v597_v15  ;;  %v499_v19 = vmul.f32 0.020408163, %v363_v58  ;;  %v2820_v51 = vmul.f32 %v1812_v30, %v739_v59  ;;  %v1814_v16 = vpop.eup %1813  ;;  %v734_v15 = vld [vmem:[%s4002_s1 + $0x80] sm:$0xff] }
 0x12e   :  { %v498_v34 = vmul.f32 0.020408163, %v360_v50  ;;  %v2837_v30 = vmul.f32 0.020408163, %v2519_v7  ;;  %v644_v43 = vadd.f32 1e-05, %v594_v57  ;;  %v2844_v49 = vmul.f32 %v1814_v16, %v734_v15 }
 0x12f   :  { %1827 = vrsqrt.f32 %v647_v44  ;;  %v599_v25 = vsub.f32 %v499_v19, %v549_v26  ;;  %1125 = vperm.xlu0 %1773, %v2820_v51   ;;  %v2842_v19 = vmul.f32 0.020408163, %v2517_v32  ;;  %v2850_v50 = vmul.f32 0.020408163, %v2523_v47  ;;  %v736_v32 = vld [vmem:[%s4002_s1 + $0x90] sm:$0xff] }
 0x130   :  { %v1816_v59 = vpop.eup %1815  ;;  %1090 = vperm.xlu1 %1774, %v2822_v1   ;;  %v369_v5 = vpop.xlane.xlu1 %368  ;;  %4079 = vst [vmem:[#allocation31_spill] sm:$0xff] %v2837_v30  ;;  %1829 = vrsqrt.f32 %v642_v42  ;;  %v646_v42 = vadd.f32 1e-05, %v596_v4  ;;  %v598_v57 = vsub.f32 %v498_v34, %v548_v39  ;;  %v553_v47 = vmul.f32 %v2837_v30, %v2837_v30  ;;  %v745_v39 = vld [vmem:[%s4002_s1 + $0xd8] sm:$0xff]  ;;  %v747_v30 = vld [vmem:[%s4002_s1 + $0xe8] sm:$0xff] }
 0x131   :  { %v366_v56 = vpop.xlane.xlu0 %365  ;;  %v649_v58 = vadd.f32 1e-05, %v599_v25  ;;  %v501_v26 = vmul.f32 0.020408163, %v369_v5  ;;  %v2839_v44 = vmul.f32 %v1816_v59, %v741_v6  ;;  %4080 = vst [vmem:[#allocation32_spill] sm:$0xff] %v2842_v19  ;;  %v1818_v38 = vpop.eup %1817  ;;  %4081 = vst [vmem:[#allocation33_spill] sm:$0xff] %v2850_v50 }
 0x132   :  { %v500_v6 = vmul.f32 0.020408163, %v366_v56  ;;  %v2869_v34 = vmul.f32 0.020408163, %v2521_v33  ;;  %v555_v56 = vmul.f32 %v2850_v50, %v2850_v50 }
 0x133   :  { %1831 = vrsqrt.f32 %v649_v58  ;;  %v601_v7 = vsub.f32 %v501_v26, %v551_v60  ;;  %1135 = vperm.xlu0 %1773, %v2839_v44   ;;  %v550_v58 = vmul.f32 %v2842_v19, %v2842_v19  ;;  %v2863_v26 = vmul.f32 %v1818_v38, %v736_v32 }
 0x134   :  { %v1820_v25 = vpop.eup %1819  ;;  %1100 = vperm.xlu1 %1774, %v2844_v49   ;;  %v375_v16 = vpop.xlane.xlu1 %374  ;;  %1833 = vrsqrt.f32 %v644_v43  ;;  %4082 = vst [vmem:[#allocation34_spill] sm:$0xff] %v2869_v34  ;;  %v738_v43 = vld [vmem:[%s4002_s1 + $0xa0] sm:$0xff]  ;;  %v648_v32 = vadd.f32 1e-05, %v598_v57  ;;  %v2891_v57 = vmul.f32 0.020408163, %v2525_v54 }
 0x135   :  { %v372_v15 = vpop.xlane.xlu0 %371  ;;  %v651_v59 = vadd.f32 1e-05, %v601_v7  ;;  %v503_v5 = vmul.f32 0.020408163, %v375_v16  ;;  %v2859_v60 = vmul.f32 %v1820_v25, %v743_v17  ;;  %v1822_v4 = vpop.eup %1821  ;;  %v2878_v7 = vmul.f32 0.020408163, %v2527_v2 }
 0x136   :  { %v600_v25 = vsub.f32 %v500_v6, %v550_v58  ;;  %v2883_v50 = vmul.f32 %v1822_v4, %v738_v43  ;;  %4084 = vst [vmem:[#allocation36_spill] sm:$0xff] %v2891_v57  ;;  %v2900_v4 = vmul.f32 0.020408163, %v2531_v55 }
 0x137   :  { %1835 = vrsqrt.f32 %v651_v59  ;;  %v603_v17 = vsub.f32 %v503_v5, %v553_v47  ;;  %1145 = vperm.xlu0 %1773, %v2859_v60   ;;  %4083 = vst [vmem:[#allocation35_spill] sm:$0xff] %v2878_v7  ;;  %v502_v59 = vmul.f32 0.020408163, %v372_v15  ;;  %v740_v15 = vld [vmem:[%s4002_s1 + $0xb0] sm:$0xff] }
 0x138   :  { %v1824_v38 = vpop.eup %1823  ;;  %1837 = vrsqrt.f32 %v646_v42  ;;  %1110 = vperm.xlu1 %1774, %v2863_v26   ;;  %v381_v33 = vpop.xlane.xlu1 %380  ;;  %v552_v42 = vmul.f32 %v2869_v34, %v2869_v34  ;;  %4085 = vst [vmem:[#allocation37_spill] sm:$0xff] %v2900_v4 }
 0x139   :  { %v378_v16 = vpop.xlane.xlu0 %377  ;;  %v653_v19 = vadd.f32 1e-05, %v603_v17  ;;  %v505_v47 = vmul.f32 0.020408163, %v381_v33  ;;  %v2881_v5 = vmul.f32 %v1824_v38, %v745_v39  ;;  %v1826_v2 = vpop.eup %1825  ;;  %v557_v39 = vmul.f32 %v2878_v7, %v2878_v7  ;;  %v749_v7 = vld [vmem:[%s4002_s1 + $0xf8] sm:$0xff] }
 0x13a   :  { %v650_v17 = vadd.f32 1e-05, %v600_v25  ;;  %v2905_v34 = vmul.f32 %v1826_v2, %v740_v15  ;;  %v559_v2 = vmul.f32 %v2900_v4, %v2900_v4  ;;  %v751_v4 = vld [vmem:[%s4002_s1 + $0x108] sm:$0xff] }
 0x13b   :  { %1839 = vrsqrt.f32 %v653_v19  ;;  %v605_v6 = vsub.f32 %v505_v47, %v555_v56  ;;  %1155 = vperm.xlu0 %1773, %v2881_v5   ;;  %v602_v56 = vsub.f32 %v502_v59, %v552_v42  ;;  %v504_v47 = vmul.f32 0.020408163, %v378_v16 }
 0x13c   :  { %v1828_v58 = vpop.eup %1827  ;;  %1841 = vrsqrt.f32 %v648_v32  ;;  %1120 = vperm.xlu1 %1774, %v2883_v50   ;;  %v387_v54 = vpop.xlane.xlu1 %386  ;;  %v554_v32 = vmul.f32 %v2891_v57, %v2891_v57  ;;  %v2917_v16 = vmul.f32 0.020408163, %v2529_v0  ;;  %v2922_v42 = vmul.f32 0.020408163, %v2535_v8 }
 0x13d   :  { %v384_v19 = vpop.xlane.xlu0 %383  ;;  %v655_v43 = vadd.f32 1e-05, %v605_v6  ;;  %v507_v38 = vmul.f32 0.020408163, %v387_v54  ;;  %v2903_v33 = vmul.f32 %v1828_v58, %v747_v30  ;;  %v1830_v55 = vpop.eup %1829  ;;  %v742_v30 = vld [vmem:[%s4002_s1 + $0xc0] sm:$0xff] }
 0x13e   :  { %4086 = vst [vmem:[#allocation38_spill] sm:$0xff] %v2917_v16  ;;  %4087 = vst [vmem:[#allocation39_spill] sm:$0xff] %v2922_v42  ;;  %v652_v58 = vadd.f32 1e-05, %v602_v56  ;;  %v506_v57 = vmul.f32 0.020408163, %v384_v19  ;;  %v2927_v0 = vmul.f32 %v1830_v55, %v742_v30 }
 0x13f   :  { %1843 = vrsqrt.f32 %v655_v43  ;;  %v607_v25 = vsub.f32 %v507_v38, %v557_v39  ;;  %1165 = vperm.xlu0 %1773, %v2903_v33   ;;  %v604_v38 = vsub.f32 %v504_v47, %v554_v32  ;;  %v744_v56 = vld [vmem:[%s4002_s1 + $0xd0] sm:$0xff]  ;;  %v2939_v19 = vmul.f32 0.020408163, %v2533_v40 }
 0x140   :  { %v1832_v59 = vpop.eup %1831  ;;  %1845 = vrsqrt.f32 %v650_v17  ;;  %1130 = vperm.xlu1 %1774, %v2905_v34   ;;  %v393_v6 = vpop.xlane.xlu1 %392  ;;  %4088 = vst [vmem:[#allocation40_spill] sm:$0xff] %v2927_v0  ;;  %v561_v47 = vmul.f32 %v2922_v42, %v2922_v42  ;;  %v2944_v55 = vmul.f32 0.020408163, %v2539_v63  ;;  %v753_v63 = vld [vmem:[%s4002_s1 + $0x118] sm:$0xff]  ;;  %v746_v42 = vld [vmem:[%s4002_s1 + $0xe0] sm:$0xff] }
 0x141   :  { %v390_v15 = vpop.xlane.xlu0 %389  ;;  %v657_v39 = vadd.f32 1e-05, %v607_v25  ;;  %v509_v54 = vmul.f32 0.020408163, %v393_v6  ;;  %v2925_v43 = vmul.f32 %v1832_v59, %v749_v7  ;;  %v1834_v8 = vpop.eup %1833  ;;  %v556_v7 = vmul.f32 %v2917_v16, %v2917_v16  ;;  %4089 = vst [vmem:[#allocation41_spill] sm:$0xff] %v2939_v19 }
 0x142   :  { %4090 = vst [vmem:[#allocation42_spill] sm:$0xff] %v2944_v55  ;;  %v508_v40 = vmul.f32 0.020408163, %v390_v15  ;;  %v2949_v28 = vmul.f32 %v1834_v8, %v744_v56  ;;  %v563_v15 = vmul.f32 %v2944_v55, %v2944_v55 }
 0x143   :  { %1847 = vrsqrt.f32 %v657_v39  ;;  %v609_v17 = vsub.f32 %v509_v54, %v559_v2  ;;  %1175 = vperm.xlu0 %1773, %v2925_v43   ;;  %v654_v54 = vadd.f32 1e-05, %v604_v38  ;;  %v606_v16 = vsub.f32 %v506_v57, %v556_v7 }
 0x144   :  { %v1836_v25 = vpop.eup %1835  ;;  %1140 = vperm.xlu1 %1774, %v2927_v0   ;;  %v399_v32 = vpop.xlane.xlu1 %398  ;;  %1849 = vrsqrt.f32 %v652_v58  ;;  %v2961_v57 = vmul.f32 0.020408163, %v2537_v9  ;;  %v2966_v38 = vmul.f32 0.020408163, %v2543_v12  ;;  %v755_v12 = vld [vmem:[%s4002_s1 + $0x128] sm:$0xff] }
 0x145   :  { %v396_v30 = vpop.xlane.xlu0 %395  ;;  %v1838_v59 = vpop.eup %1837  ;;  %v659_v2 = vadd.f32 1e-05, %v609_v17  ;;  %v511_v6 = vmul.f32 0.020408163, %v399_v32  ;;  %v2947_v39 = vmul.f32 %v1836_v25, %v751_v4  ;;  %v558_v4 = vmul.f32 %v2939_v19, %v2939_v19  ;;  %v748_v19 = vld [vmem:[%s4002_s1 + $0xf0] sm:$0xff] }
 0x146   :  { %4091 = vst [vmem:[#allocation43_spill] sm:$0xff] %v2961_v57  ;;  %v2971_v32 = vmul.f32 %v1838_v59, %v746_v42  ;;  %v656_v9 = vadd.f32 1e-05, %v606_v16  ;;  %v560_v42 = vmul.f32 %v2961_v57, %v2961_v57  ;;  %v2983_v16 = vmul.f32 0.020408163, %v2541_v14  ;;  %v750_v57 = vld [vmem:[%s4002_s1 + $0x100] sm:$0xff] }
 0x147   :  { %1851 = vrsqrt.f32 %v659_v2  ;;  %v611_v0 = vsub.f32 %v511_v6, %v561_v47  ;;  %1185 = vperm.xlu0 %1773, %v2947_v39   ;;  %v608_v2 = vsub.f32 %v508_v40, %v558_v4  ;;  %v510_v6 = vmul.f32 0.020408163, %v396_v30 }
 0x148   :  { %v1840_v58 = vpop.eup %1839  ;;  %1150 = vperm.xlu1 %1774, %v2949_v28   ;;  %v405_v8 = vpop.xlane.xlu1 %404  ;;  %1853 = vrsqrt.f32 %v654_v54  ;;  %4092 = vst [vmem:[#allocation44_spill] sm:$0xff] %v2983_v16  ;;  %v565_v30 = vmul.f32 %v2966_v38, %v2966_v38  ;;  %v2988_v59 = vmul.f32 0.020408163, %v2550_v22  ;;  %v757_v22 = vld [vmem:[%s4002_s1 + $0x138] sm:$0xff] }
 0x149   :  { %v402_v17 = vpop.xlane.xlu0 %401  ;;  %v1842_v56 = vpop.eup %1841  ;;  %v661_v25 = vadd.f32 1e-05, %v611_v0  ;;  %v513_v7 = vmul.f32 0.020408163, %v405_v8  ;;  %v2969_v47 = vmul.f32 %v1840_v58, %v753_v63  ;;  %v658_v14 = vadd.f32 1e-05, %v608_v2 }
 0x14a   :  { %v2993_v8 = vmul.f32 %v1842_v56, %v748_v19  ;;  %v562_v19 = vmul.f32 %v2983_v16, %v2983_v16  ;;  %v3005_v56 = vmul.f32 0.020408163, %v2545_v13  ;;  %v759_v13 = vld [vmem:[%s4002_s1 + $0x148] sm:$0xff]  ;;  %v752_v16 = vld [vmem:[%s4002_s1 + $0x110] sm:$0xff] }
 0x14b   :  { %1855 = vrsqrt.f32 %v661_v25  ;;  %v613_v55 = vsub.f32 %v513_v7, %v563_v15  ;;  %1195 = vperm.xlu0 %1773, %v2969_v47   ;;  %v610_v25 = vsub.f32 %v510_v6, %v560_v42  ;;  %v512_v7 = vmul.f32 0.020408163, %v402_v17 }
 0x14c   :  { %v1844_v0 = vpop.eup %1843  ;;  %1160 = vperm.xlu1 %1774, %v2971_v32   ;;  %v411_v54 = vpop.xlane.xlu1 %410  ;;  %1857 = vrsqrt.f32 %v656_v9  ;;  %4093 = vst [vmem:[#allocation45_spill] sm:$0xff] %v3005_v56  ;;  %v567_v17 = vmul.f32 %v2988_v59, %v2988_v59 }
 0x14d   :  { %v1846_v40 = vpop.eup %1845  ;;  %v663_v63 = vadd.f32 1e-05, %v613_v55  ;;  %v515_v58 = vmul.f32 0.020408163, %v411_v54  ;;  %v408_v4 = vpop.xlane.xlu0 %407  ;;  %v2991_v15 = vmul.f32 %v1844_v0, %v755_v12  ;;  %v660_v54 = vadd.f32 1e-05, %v610_v25 }
 0x14e   :  { %v3012_v42 = vmul.f32 %v1846_v40, %v750_v57  ;;  %v564_v40 = vmul.f32 %v3005_v56, %v3005_v56 }
 0x14f   :  { %1859 = vrsqrt.f32 %v663_v63  ;;  %v615_v55 = vsub.f32 %v515_v58, %v565_v30  ;;  %1205 = vperm.xlu0 %1773, %v2991_v15   ;;  %v612_v63 = vsub.f32 %v512_v7, %v562_v19  ;;  %v514_v58 = vmul.f32 0.020408163, %v408_v4 }
 0x150   :  { %v1848_v12 = vpop.eup %1847  ;;  %1170 = vperm.xlu1 %1774, %v2993_v8   ;;  %v417_v9 = vpop.xlane.xlu1 %416  ;;  %1861 = vrsqrt.f32 %v658_v14  ;;  %v4094_v14 = vld [vmem:[#allocation3_spill] sm:$0xff] }
 0x151   :  { %v665_v2 = vadd.f32 1e-05, %v615_v55  ;;  %v517_v6 = vmul.f32 0.020408163, %v417_v9  ;;  %v3010_v0 = vmul.f32 %v1848_v12, %v757_v22  ;;  %v1850_v30 = vpop.eup %1849  ;;  %v414_v9 = vpop.xlane.xlu0 %413  ;;  %v3024_v25 = vmul.f32 0.020408163, %v4094_v14 }
 0x152   :  { %v3029_v22 = vmul.f32 %v1850_v30, %v752_v16  ;;  %v662_v12 = vadd.f32 1e-05, %v612_v63  ;;  %v614_v19 = vsub.f32 %v514_v58, %v564_v40  ;;  %v756_v40 = vld [vmem:[%s4002_s1 + $0x130] sm:$0xff] }
 0x153   :  { %1863 = vrsqrt.f32 %v665_v2  ;;  %v617_v55 = vsub.f32 %v517_v6, %v567_v17  ;;  %1215 = vperm.xlu0 %1773, %v3010_v0   ;;  %4095 = vst [vmem:[#allocation3_spill] sm:$0xff] %v3024_v25  ;;  %v516_v17 = vmul.f32 0.020408163, %v414_v9  ;;  %v761_v2 = vld [vmem:[%s4002_s1 + $0x158] sm:$0xff]  ;;  %v566_v16 = vmul.f32 %v3024_v25, %v3024_v25  ;;  %v763_v9 = vld [vmem:[%s4002_s1 + $0x168] sm:$0xff] }
 0x154   :  { %v1852_v57 = vpop.eup %1851  ;;  %1180 = vperm.xlu1 %1774, %v3012_v42   ;;  %1865 = vrsqrt.f32 %v660_v54  ;;  %v664_v54 = vadd.f32 1e-05, %v614_v19 }
 0x155   :  { %v667_v4 = vadd.f32 1e-05, %v617_v55  ;;  %v3027_v7 = vmul.f32 %v1852_v57, %v759_v13  ;;  %v1854_v6 = vpop.eup %1853  ;;  %v754_v55 = vld [vmem:[%s4002_s1 + $0x120] sm:$0xff]  ;;  %v616_v63 = vsub.f32 %v516_v17, %v566_v16  ;;  %v765_v17 = vld [vmem:[%s4002_s1 + $0x178] sm:$0xff] }
 0x156   :  { %v3043_v58 = vmul.f32 %v1854_v6, %v754_v55  ;;  %v758_v6 = vld [vmem:[%s4002_s1 + $0x140] sm:$0xff] }
 0x157   :  { %1867 = vrsqrt.f32 %v667_v4  ;;  %1225 = vperm.xlu0 %1773, %v3027_v7  }
 0x158   :  { %v1856_v13 = vpop.eup %1855  ;;  %1190 = vperm.xlu1 %1774, %v3029_v22   ;;  %1869 = vrsqrt.f32 %v662_v12  ;;  %v666_v12 = vadd.f32 1e-05, %v616_v63 }
 0x159   :  { %v3041_v30 = vmul.f32 %v1856_v13, %v761_v2  ;;  %v1858_v57 = vpop.eup %1857  ;;  %1871 = vrsqrt.f32 %v664_v54  ;;  %v767_v54 = vld [vmem:[%s4002_s1 + $0x188] sm:$0xff] }
 0x15a   :  { %v3055_v19 = vmul.f32 %v1858_v57, %v756_v40  ;;  %1873 = vrsqrt.f32 %v666_v12 }
 0x15b   :  { %1235 = vperm.xlu0 %1773, %v3041_v30  }
 0x15c   :  { %v1860_v14 = vpop.eup %1859  ;;  %1200 = vperm.xlu1 %1774, %v3043_v58  }
 0x15d   :  { %v3053_v4 = vmul.f32 %v1860_v14, %v763_v9  ;;  %v1862_v2 = vpop.eup %1861  ;;  %v760_v9 = vld [vmem:[%s4002_s1 + $0x150] sm:$0xff] }
 0x15e   :  { %v3067_v16 = vmul.f32 %v1862_v2, %v758_v6  ;;  %v4096_v14 = vld [vmem:[#allocation4_spill] sm:$0xff]  ;;  %v769_v2 = vld [vmem:[%s4003_s2 + $0x8] sm:$0xff] }
 0x15f   :  { %1245 = vperm.xlu0 %1773, %v3053_v4   ;;  %v869_v12 = vmul.f32 %v2615_v62, %v4096_v14  ;;  %v764_v14 = vld [vmem:[%s4002_s1 + $0x170] sm:$0xff] }
 0x160   :  { %v1864_v55 = vpop.eup %1863  ;;  %1210 = vperm.xlu1 %1774, %v3055_v19  }
 0x161   :  { %v3065_v13 = vmul.f32 %v1864_v55, %v765_v17  ;;  %v1866_v63 = vpop.eup %1865  ;;  %v762_v55 = vld [vmem:[%s4002_s1 + $0x160] sm:$0xff] }
 0x162   :  { %v3081_v17 = vmul.f32 %v1866_v63, %v760_v9  ;;  %v771_v63 = vld [vmem:[%s4003_s2 + $0x18] sm:$0xff] }
 0x163   :  { %1255 = vperm.xlu0 %1773, %v3065_v13  }
 0x164   :  { %v1868_v57 = vpop.eup %1867  ;;  %1220 = vperm.xlu1 %1774, %v3067_v16  }
 0x165   :  { %v3077_v40 = vmul.f32 %v1868_v57, %v767_v54  ;;  %v1870_v6 = vpop.eup %1869  ;;  %v919_v54 = vsub.f32 %v769_v2, %v869_v12  ;;  %v4097_v57 = vld [vmem:[#allocation5_spill] sm:$0xff]  ;;  %v873_v12 = vmul.f32 %v2685_v11, %v2575_v31  ;;  %v4098_v11 = vld [vmem:[#allocation2_spill] sm:$0xff] }
 0x166   :  { %v871_v25 = vmul.f32 %v2648_v48, %v4097_v57  ;;  %v3093_v62 = vmul.f32 %v1870_v6, %v762_v55  ;;  %v1872_v9 = vpop.eup %1871  ;;  %v773_v48 = vld [vmem:[%s4003_s2 + $0x28] sm:$0xff]  ;;  %v766_v55 = vld [vmem:[%s4002_s1 + $0x180] sm:$0xff]  ;;  %v775_v31 = vld [vmem:[%s4003_s2 + $0x38] sm:$0xff] }
 0x167   :  { %1265 = vperm.xlu0 %1773, %v3077_v40   ;;  %v3104_v2 = vmul.f32 %v1872_v9, %v764_v14  ;;  %v1874_v6 = vpop.eup %1873  ;;  %v4099_v14 = vld [vmem:[#allocation9_spill] sm:$0xff] }
 0x168   :  { %1230 = vperm.xlu1 %1774, %v3081_v17   ;;  %v921_v56 = vsub.f32 %v771_v63, %v871_v25  ;;  %v875_v25 = vmul.f32 %v2729_v18, %v2588_v36  ;;  %v3115_v57 = vmul.f32 %v1874_v6, %v766_v55  ;;  %v868_v63 = vmul.f32 %v2620_v29, %v4098_v11  ;;  %v770_v29 = vld [vmem:[%s4003_s2 + $0x10] sm:$0xff]  ;;  %v4102_v11 = vld [vmem:[#allocation7_spill] sm:$0xff] }
 0x169   :  { %v877_v36 = vmul.f32 %v2683_v21, %v4099_v14  ;;  %v779_v21 = vld [vmem:[%s4003_s2 + $0x58] sm:$0xff] }
 0x16a   :  { %v925_v9 = vsub.f32 %v775_v31, %v875_v25 }
 0x16b   :  { %1325 = vperm.xlu0 %1773, %v919_v54   ;;  %v923_v54 = vsub.f32 %v773_v48, %v873_v12  ;;  %v777_v12 = vld [vmem:[%s4003_s2 + $0x48] sm:$0xff]  ;;  %v4100_v48 = vld [vmem:[#allocation6_spill] sm:$0xff] }
 0x16c   :  { %1240 = vperm.xlu1 %1774, %v3093_v62   ;;  %v870_v6 = vmul.f32 %v2634_v20, %v4100_v48  ;;  %v927_v55 = vsub.f32 %v777_v12, %v877_v36  ;;  %v772_v20 = vld [vmem:[%s4003_s2 + $0x20] sm:$0xff]  ;;  %v4103_v36 = vld [vmem:[#allocation8_spill] sm:$0xff]  ;;  %v883_v48 = vmul.f32 %v2749_v46, %v2627_v37 }
 0x16e   :  { %v920_v31 = vsub.f32 %v770_v29, %v870_v6  ;;  %v4104_v29 = vld [vmem:[#allocation10_spill] sm:$0xff] }
 0x16f   :  { %1335 = vperm.xlu0 %1773, %v921_v56   ;;  %v768_v56 = vld [vmem:[%s4003_s2] sm:$0xff] }
 0x170   :  { %1250 = vperm.xlu1 %1774, %v3104_v2   ;;  %v918_v18 = vsub.f32 %v768_v56, %v868_v63  ;;  %v872_v63 = vmul.f32 %v2664_v52, %v4102_v11  ;;  %v774_v52 = vld [vmem:[%s4003_s2 + $0x30] sm:$0xff] }
 0x172   :  { %v922_v14 = vsub.f32 %v772_v20, %v872_v63 }
 0x173   :  { %1345 = vperm.xlu0 %1773, %v923_v54   ;;  %v4101_v54 = vld [vmem:[#allocation11_spill] sm:$0xff] }
 0x174   :  { %1260 = vperm.xlu1 %1774, %v3115_v57   ;;  %v879_v25 = vmul.f32 %v2705_v10, %v4101_v54  ;;  %v781_v10 = vld [vmem:[%s4003_s2 + $0x68] sm:$0xff] }
 0x176   :  { %v929_v56 = vsub.f32 %v779_v21, %v879_v25  ;;  %v4105_v25 = vld [vmem:[#allocation14_spill] sm:$0xff]  ;;  %v4106_v21 = vld [vmem:[#allocation12_spill] sm:$0xff] }
 0x177   :  { %1355 = vperm.xlu0 %1773, %v925_v9   ;;  %v881_v9 = vmul.f32 %v2727_v61, %v2613_v41  ;;  %v783_v61 = vld [vmem:[%s4003_s2 + $0x78] sm:$0xff]  ;;  %v885_v37 = vmul.f32 %v2771_v53, %v4105_v25  ;;  %v878_v11 = vmul.f32 %v2773_v23, %v4106_v21 }
 0x178   :  { %1320 = vperm.xlu1 %1774, %v918_v18   ;;  %v874_v18 = vmul.f32 %v2707_v24, %v4103_v36  ;;  %v876_v24 = vmul.f32 %v2751_v45, %v4104_v29  ;;  %v933_v54 = vsub.f32 %v783_v61, %v883_v48  ;;  %v778_v45 = vld [vmem:[%s4003_s2 + $0x50] sm:$0xff]  ;;  %v789_v61 = vld [vmem:[%s4003_s2 + $0xa8] sm:$0xff] }
 0x179   :  { %v931_v12 = vsub.f32 %v781_v10, %v881_v9  ;;  %v928_v9 = vsub.f32 %v778_v45, %v878_v11  ;;  %v4108_v10 = vld [vmem:[#allocation13_spill] sm:$0xff]  ;;  %v784_v45 = vld [vmem:[%s4003_s2 + $0x80] sm:$0xff] }
 0x17a   :  { %v924_v41 = vsub.f32 %v774_v52, %v874_v18  ;;  %v880_v23 = vmul.f32 %v2798_v27, %v4108_v10  ;;  %v780_v18 = vld [vmem:[%s4003_s2 + $0x60] sm:$0xff]  ;;  %v4110_v27 = vld [vmem:[#allocation15_spill] sm:$0xff] }
 0x17b   :  { %1365 = vperm.xlu0 %1773, %v927_v55   ;;  %v776_v55 = vld [vmem:[%s4003_s2 + $0x40] sm:$0xff]  ;;  %v882_v29 = vmul.f32 %v2822_v1, %v4110_v27  ;;  %v4112_v1 = vld [vmem:[#allocation17_spill] sm:$0xff] }
 0x17c   :  { %1330 = vperm.xlu1 %1774, %v920_v31   ;;  %v926_v46 = vsub.f32 %v776_v55, %v876_v24  ;;  %v785_v31 = vld [vmem:[%s4003_s2 + $0x88] sm:$0xff]  ;;  %v782_v55 = vld [vmem:[%s4003_s2 + $0x70] sm:$0xff]  ;;  %v884_v21 = vmul.f32 %v2844_v49, %v4112_v1 }
 0x17d   :  { %v935_v20 = vsub.f32 %v785_v31, %v885_v37  ;;  %v791_v31 = vld [vmem:[%s4003_s2 + $0xb8] sm:$0xff]  ;;  %v4114_v49 = vld [vmem:[#allocation19_spill] sm:$0xff] }
 0x17e   :  { %v886_v10 = vmul.f32 %v2863_v26, %v4114_v49  ;;  %v4116_v26 = vld [vmem:[#allocation21_spill] sm:$0xff] }
 0x17f   :  { %1375 = vperm.xlu0 %1773, %v929_v56   ;;  %v4107_v56 = vld [vmem:[#allocation16_spill] sm:$0xff]  ;;  %v888_v27 = vmul.f32 %v2883_v50, %v4116_v26  ;;  %v4118_v50 = vld [vmem:[#allocation23_spill] sm:$0xff] }
 0x180   :  { %1340 = vperm.xlu1 %1774, %v922_v14   ;;  %v887_v53 = vmul.f32 %v2796_v3, %v4107_v56  ;;  %v787_v14 = vld [vmem:[%s4003_s2 + $0x98] sm:$0xff]  ;;  %v890_v1 = vmul.f32 %v2905_v34, %v4118_v50 }
 0x181   :  { %v4119_v34 = vld [vmem:[#allocation25_spill] sm:$0xff] }
 0x182   :  { %v3158_v6 = vpop.permute.xlu1 %1025  ;;  %v937_v52 = vsub.f32 %v787_v14, %v887_v53  ;;  %v793_v14 = vld [vmem:[%s4003_s2 + $0xc8] sm:$0xff] }
 0x183   :  { %1385 = vperm.xlu0 %1773, %v931_v12   ;;  %v4109_v12 = vld [vmem:[#allocation18_spill] sm:$0xff]  ;;  %v3194_v48 = vpop.permute.xlu0 %1020 }
 0x184   :  { %1350 = vperm.xlu1 %1774, %v924_v41   ;;  %v889_v3 = vmul.f32 %v2820_v51, %v4109_v12  ;;  %v930_v41 = vsub.f32 %v780_v18, %v880_v23  ;;  %v4111_v51 = vld [vmem:[#allocation20_spill] sm:$0xff] }
 0x185   :  { %v891_v25 = vmul.f32 %v2839_v44, %v4111_v51  ;;  %v4113_v44 = vld [vmem:[#allocation22_spill] sm:$0xff]  ;;  %v786_v18 = vld [vmem:[%s4003_s2 + $0x90] sm:$0xff] }
 0x186   :  { %v893_v56 = vmul.f32 %v2859_v60, %v4113_v44  ;;  %v4115_v60 = vld [vmem:[#allocation24_spill] sm:$0xff] }
 0x187   :  { %v3175_v63 = vpop.permute.xlu1 %1030  ;;  %1395 = vperm.xlu0 %1773, %v933_v54   ;;  %v939_v54 = vsub.f32 %v789_v61, %v889_v3  ;;  %v895_v12 = vmul.f32 %v2881_v5, %v4115_v60  ;;  %v795_v61 = vld [vmem:[%s4003_s2 + $0xd8] sm:$0xff]  ;;  %v4117_v5 = vld [vmem:[#allocation26_spill] sm:$0xff] }
 0x188   :  { %1360 = vperm.xlu1 %1774, %v926_v46   ;;  %v932_v46 = vsub.f32 %v782_v55, %v882_v29  ;;  %v788_v55 = vld [vmem:[%s4003_s2 + $0xa0] sm:$0xff]  ;;  %v897_v51 = vmul.f32 %v2903_v33, %v4117_v5  ;;  %v899_v33 = vmul.f32 %v2925_v43, %v2793_v35 }
 0x189   :  { %v4121_v35 = vld [vmem:[#allocation30_spill] sm:$0xff] }
 0x18a   :  { %v901_v43 = vmul.f32 %v2947_v39, %v4121_v35  ;;  %v4123_v39 = vld [vmem:[#allocation31_spill] sm:$0xff] }
 0x18b   :  { %v3187_v36 = vpop.permute.xlu1 %1035  ;;  %1405 = vperm.xlu0 %1773, %v935_v20   ;;  %v941_v20 = vsub.f32 %v791_v31, %v891_v25  ;;  %v797_v31 = vld [vmem:[%s4003_s2 + $0xe8] sm:$0xff]  ;;  %v903_v5 = vmul.f32 %v2969_v47, %v4123_v39  ;;  %v4125_v47 = vld [vmem:[#allocation33_spill] sm:$0xff] }
 0x18c   :  { %1370 = vperm.xlu1 %1774, %v928_v9   ;;  %v934_v9 = vsub.f32 %v784_v45, %v884_v21  ;;  %v790_v45 = vld [vmem:[%s4003_s2 + $0xb0] sm:$0xff] }
 0x18f   :  { %v3201_v24 = vpop.permute.xlu1 %1040  ;;  %1415 = vperm.xlu0 %1773, %v937_v52   ;;  %v943_v52 = vsub.f32 %v793_v14, %v893_v56  ;;  %v940_v56 = vsub.f32 %v790_v45, %v890_v1  ;;  %v4120_v14 = vld [vmem:[#allocation40_spill] sm:$0xff]  ;;  %v796_v45 = vld [vmem:[%s4003_s2 + $0xe0] sm:$0xff] }
 0x190   :  { %1380 = vperm.xlu1 %1774, %v930_v41   ;;  %v936_v41 = vsub.f32 %v786_v18, %v886_v10  ;;  %v892_v49 = vmul.f32 %v4120_v14, %v4119_v34  ;;  %v792_v18 = vld [vmem:[%s4003_s2 + $0xc0] sm:$0xff]  ;;  %v805_v34 = vld [vmem:[%s4003_s2 + $0x128] sm:$0xff] }
 0x192   :  { %v3208_v37 = vpop.permute.xlu0 %1065 }
 0x193   :  { %v3215_v11 = vpop.permute.xlu1 %1045  ;;  %1425 = vperm.xlu0 %1773, %v939_v54   ;;  %v945_v54 = vsub.f32 %v795_v61, %v895_v12  ;;  %v942_v12 = vsub.f32 %v792_v18, %v892_v49  ;;  %v4122_v61 = vld [vmem:[#allocation27_spill] sm:$0xff]  ;;  %v798_v18 = vld [vmem:[%s4003_s2 + $0xf0] sm:$0xff] }
 0x194   :  { %1390 = vperm.xlu1 %1774, %v932_v46   ;;  %v938_v46 = vsub.f32 %v788_v55, %v888_v27  ;;  %v894_v26 = vmul.f32 %v2949_v28, %v4122_v61  ;;  %v794_v55 = vld [vmem:[%s4003_s2 + $0xd0] sm:$0xff] }
 0x195   :  { %v4124_v28 = vld [vmem:[#allocation28_spill] sm:$0xff] }
 0x196   :  { %v3222_v53 = vpop.permute.xlu0 %1075  ;;  %v896_v50 = vmul.f32 %v2971_v32, %v4124_v28  ;;  %v4126_v32 = vld [vmem:[#allocation29_spill] sm:$0xff] }
 0x197   :  { %v3229_v23 = vpop.permute.xlu1 %1050  ;;  %1435 = vperm.xlu0 %1773, %v941_v20   ;;  %v947_v20 = vsub.f32 %v797_v31, %v897_v51  ;;  %v803_v31 = vld [vmem:[%s4003_s2 + $0x118] sm:$0xff]  ;;  %v898_v14 = vmul.f32 %v2993_v8, %v4126_v32  ;;  %v4128_v8 = vld [vmem:[#allocation32_spill] sm:$0xff] }
 0x198   :  { %1400 = vperm.xlu1 %1774, %v934_v9   ;;  %v799_v9 = vld [vmem:[%s4003_s2 + $0xf8] sm:$0xff]  ;;  %v900_v61 = vmul.f32 %v3012_v42, %v4128_v8  ;;  %v4130_v42 = vld [vmem:[#allocation34_spill] sm:$0xff] }
 0x199   :  { %v902_v28 = vmul.f32 %v3029_v22, %v4130_v42  ;;  %v4132_v22 = vld [vmem:[#allocation36_spill] sm:$0xff] }
 0x19a   :  { %v3236_v3 = vpop.permute.xlu0 %1085  ;;  %v904_v32 = vmul.f32 %v3043_v58, %v4132_v22  ;;  %v4134_v58 = vld [vmem:[#allocation38_spill] sm:$0xff] }
 0x19b   :  { %v3243_v29 = vpop.permute.xlu1 %1055  ;;  %1445 = vperm.xlu0 %1773, %v943_v52   ;;  %v949_v52 = vsub.f32 %v799_v9, %v899_v33  ;;  %v905_v33 = vmul.f32 %v2991_v15, %v4125_v47  ;;  %v946_v9 = vsub.f32 %v796_v45, %v896_v50  ;;  %v4127_v15 = vld [vmem:[#allocation35_spill] sm:$0xff]  ;;  %v802_v45 = vld [vmem:[%s4003_s2 + $0x110] sm:$0xff]  ;;  %v906_v8 = vmul.f32 %v3055_v19, %v4134_v58  ;;  %v4135_v19 = vld [vmem:[#allocation41_spill] sm:$0xff] }
 0x19c   :  { %1410 = vperm.xlu1 %1774, %v936_v41   ;;  %v801_v41 = vld [vmem:[%s4003_s2 + $0x108] sm:$0xff]  ;;  %v907_v35 = vmul.f32 %v3010_v0, %v4127_v15  ;;  %v4129_v0 = vld [vmem:[#allocation37_spill] sm:$0xff] }
 0x19d   :  { %v909_v39 = vmul.f32 %v3027_v7, %v4129_v0  ;;  %v4131_v7 = vld [vmem:[#allocation39_spill] sm:$0xff] }
 0x19e   :  { %v3250_v25 = vpop.permute.xlu0 %1095  ;;  %v911_v47 = vmul.f32 %v3041_v30, %v4131_v7  ;;  %v4133_v30 = vld [vmem:[#allocation42_spill] sm:$0xff]  ;;  %v817_v7 = vld [vmem:[%s4003_s2 + $0x188] sm:$0xff] }
 0x19f   :  { %v3257_v21 = vpop.permute.xlu1 %1060  ;;  %1455 = vperm.xlu0 %1773, %v945_v54   ;;  %v951_v54 = vsub.f32 %v801_v41, %v901_v43  ;;  %v807_v41 = vld [vmem:[%s4003_s2 + $0x138] sm:$0xff]  ;;  %v913_v15 = vmul.f32 %v3053_v4, %v4133_v30  ;;  %v915_v4 = vmul.f32 %v3065_v13, %v2966_v38  ;;  %v917_v38 = vmul.f32 %v3077_v40, %v2988_v59 }
 0x1a0   :  { %1420 = vperm.xlu1 %1774, %v938_v46   ;;  %v944_v46 = vsub.f32 %v794_v55, %v894_v26  ;;  %v800_v55 = vld [vmem:[%s4003_s2 + $0x100] sm:$0xff] }
 0x1a1   :  { %v967_v22 = vsub.f32 %v817_v7, %v917_v38 }
 0x1a2   :  { %v3264_v44 = vpop.permute.xlu0 %1105 }
 0x1a3   :  { %v3271_v10 = vpop.permute.xlu1 %1070  ;;  %1465 = vperm.xlu0 %1773, %v947_v20   ;;  %v953_v20 = vsub.f32 %v803_v31, %v903_v5  ;;  %v809_v31 = vld [vmem:[%s4003_s2 + $0x148] sm:$0xff] }
 0x1a4   :  { %1430 = vperm.xlu1 %1774, %v940_v56  }
 0x1a6   :  { %v3278_v60 = vpop.permute.xlu0 %1115 }
 0x1a7   :  { %v3285_v27 = vpop.permute.xlu1 %1080  ;;  %1475 = vperm.xlu0 %1773, %v949_v52   ;;  %v955_v52 = vsub.f32 %v805_v34, %v905_v33  ;;  %v811_v34 = vld [vmem:[%s4003_s2 + $0x158] sm:$0xff] }
 0x1a8   :  { %1440 = vperm.xlu1 %1774, %v942_v12   ;;  %v948_v12 = vsub.f32 %v798_v18, %v898_v14  ;;  %v804_v18 = vld [vmem:[%s4003_s2 + $0x120] sm:$0xff] }
 0x1aa   :  { %v3292_v51 = vpop.permute.xlu0 %1125 }
 0x1ab   :  { %v3299_v1 = vpop.permute.xlu1 %1090  ;;  %1485 = vperm.xlu0 %1773, %v951_v54   ;;  %v957_v54 = vsub.f32 %v807_v41, %v907_v35  ;;  %v813_v41 = vld [vmem:[%s4003_s2 + $0x168] sm:$0xff] }
 0x1ac   :  { %1450 = vperm.xlu1 %1774, %v944_v46   ;;  %v950_v46 = vsub.f32 %v800_v55, %v900_v61  ;;  %v806_v55 = vld [vmem:[%s4003_s2 + $0x130] sm:$0xff] }
 0x1ae   :  { %v3306_v56 = vpop.permute.xlu0 %1135 }
 0x1af   :  { %v3313_v49 = vpop.permute.xlu1 %1100  ;;  %1495 = vperm.xlu0 %1773, %v953_v20   ;;  %v959_v20 = vsub.f32 %v809_v31, %v909_v39  ;;  %v956_v39 = vsub.f32 %v806_v55, %v906_v8  ;;  %v908_v31 = vmul.f32 %v3067_v16, %v4135_v19  ;;  %v4136_v16 = vld [vmem:[#allocation43_spill] sm:$0xff] }
 0x1b0   :  { %1460 = vperm.xlu1 %1774, %v946_v9   ;;  %v952_v9 = vsub.f32 %v802_v45, %v902_v28  ;;  %v808_v28 = vld [vmem:[%s4003_s2 + $0x140] sm:$0xff] }
 0x1b2   :  { %v3320_v43 = vpop.permute.xlu0 %1145 }
 0x1b3   :  { %v3327_v26 = vpop.permute.xlu1 %1110  ;;  %1505 = vperm.xlu0 %1773, %v955_v52   ;;  %v961_v52 = vsub.f32 %v811_v34, %v911_v47  ;;  %v910_v47 = vmul.f32 %v3081_v17, %v4136_v16  ;;  %v810_v34 = vld [vmem:[%s4003_s2 + $0x150] sm:$0xff]  ;;  %v812_v17 = vld [vmem:[%s4003_s2 + $0x160] sm:$0xff]  ;;  %v1875_v16 = vld [vmem:[%s4001_s0 + $0x8] sm:$0xff] }
 0x1b4   :  { %1470 = vperm.xlu1 %1774, %v948_v12   ;;  %v954_v12 = vsub.f32 %v804_v18, %v904_v32  ;;  %v4137_v32 = vld [vmem:[#allocation44_spill] sm:$0xff] }
 0x1b5   :  { %v960_v40 = vsub.f32 %v810_v34, %v910_v47  ;;  %v912_v18 = vmul.f32 %v3093_v62, %v4137_v32  ;;  %v814_v62 = vld [vmem:[%s4003_s2 + $0x170] sm:$0xff]  ;;  %v1269_v47 = vmul.f32 %v1875_v16, %v3158_v6  ;;  %v969_v34 = vld [vmem:[%s4004_s3 + $0x8] sm:$0xff] }
 0x1b6   :  { %v3334_v5 = vpop.permute.xlu0 %1155 }
 0x1b7   :  { %v3341_v50 = vpop.permute.xlu1 %1120  ;;  %1515 = vperm.xlu0 %1773, %v957_v54   ;;  %v963_v54 = vsub.f32 %v813_v41, %v913_v15  ;;  %v962_v15 = vsub.f32 %v812_v17, %v912_v18  ;;  %v1876_v18 = vld [vmem:[%s4001_s0 + $0x18] sm:$0xff] }
 0x1b8   :  { %1480 = vperm.xlu1 %1774, %v950_v46   ;;  %v815_v46 = vld [vmem:[%s4003_s2 + $0x178] sm:$0xff]  ;;  %v1271_v17 = vmul.f32 %v1876_v18, %v3187_v36  ;;  %v1879_v18 = vld [vmem:[%s4001_s0] sm:$0xff] }
 0x1b9   :  { %v965_v45 = vsub.f32 %v815_v46, %v915_v4  ;;  %v816_v46 = vld [vmem:[%s4003_s2 + $0x180] sm:$0xff] }
 0x1ba   :  { %v3348_v33 = vpop.permute.xlu0 %1165 }
 0x1bb   :  { %v3355_v14 = vpop.permute.xlu1 %1130  ;;  %1525 = vperm.xlu0 %1773, %v959_v20   ;;  %v958_v20 = vsub.f32 %v808_v28, %v908_v31 }
 0x1bc   :  { %1490 = vperm.xlu1 %1774, %v952_v9  }
 0x1be   :  { %v3362_v35 = vpop.permute.xlu0 %1175 }
 0x1bf   :  { %v3369_v61 = vpop.permute.xlu1 %1140  ;;  %1535 = vperm.xlu0 %1773, %v961_v52  }
 0x1c0   :  { %1500 = vperm.xlu1 %1774, %v954_v12   ;;  %v4138_v12 = vld [vmem:[#allocation45_spill] sm:$0xff] }
 0x1c1   :  { %v914_v41 = vmul.f32 %v3104_v2, %v4138_v12  ;;  %v971_v12 = vld [vmem:[%s4004_s3 + $0x18] sm:$0xff] }
 0x1c2   :  { %v3376_v0 = vpop.permute.xlu0 %1185 }
 0x1c3   :  { %v3383_v42 = vpop.permute.xlu1 %1150  ;;  %1545 = vperm.xlu0 %1773, %v963_v54   ;;  %v964_v55 = vsub.f32 %v814_v62, %v914_v41  ;;  %v4139_v54 = vld [vmem:[#allocation3_spill] sm:$0xff] }
 0x1c4   :  { %1510 = vperm.xlu1 %1774, %v956_v39   ;;  %v916_v4 = vmul.f32 %v3115_v57, %v4139_v54  ;;  %v1877_v54 = vld [vmem:[%s4001_s0 + $0x28] sm:$0xff] }
 0x1c6   :  { %v3390_v13 = vpop.permute.xlu0 %1195  ;;  %v966_v19 = vsub.f32 %v816_v46, %v916_v4  ;;  %v1273_v4 = vmul.f32 %v1877_v54, %v3215_v11  ;;  %v973_v46 = vld [vmem:[%s4004_s3 + $0x28] sm:$0xff] }
 0x1c7   :  { %v3397_v9 = vpop.permute.xlu1 %1160  ;;  %1555 = vperm.xlu0 %1773, %v965_v45  }
 0x1c8   :  { %1520 = vperm.xlu1 %1774, %v958_v20  }
 0x1ca   :  { %v3402_v59 = vpop.permute.xlu0 %1205 }
 0x1cb   :  { %v3406_v52 = vpop.permute.xlu1 %1170  ;;  %1565 = vperm.xlu0 %1773, %v967_v22  }
 0x1cc   :  { %1530 = vperm.xlu1 %1774, %v960_v40  }
 0x1ce   :  { %v3411_v30 = vpop.permute.xlu0 %1215 }
 0x1cf   :  { %v3415_v58 = vpop.permute.xlu1 %1180 }
 0x1d0   :  { %1540 = vperm.xlu1 %1774, %v962_v15  }
 0x1d2   :  { %v3420_v8 = vpop.permute.xlu0 %1225 }
 0x1d3   :  { %v3424_v39 = vpop.permute.xlu1 %1190 }
 0x1d4   :  { %1550 = vperm.xlu1 %1774, %v964_v55  }
 0x1d6   :  { %v3429_v2 = vpop.permute.xlu0 %1235 }
 0x1d7   :  { %v3431_v31 = vpop.permute.xlu1 %1200 }
 0x1d8   :  { %1560 = vperm.xlu1 %1774, %v966_v19  }
 0x1da   :  { %v3433_v28 = vpop.permute.xlu0 %1245 }
 0x1db   :  { %v3435_v45 = vpop.permute.xlu1 %1210 }
 0x1de   :  { %v3437_v38 = vpop.permute.xlu0 %1255 }
 0x1df   :  { %v3439_v57 = vpop.permute.xlu1 %1220 }
 0x1e2   :  { %v3441_v20 = vpop.permute.xlu0 %1265 }
 0x1e3   :  { %v3443_v7 = vpop.permute.xlu1 %1230 }
 0x1e6   :  { %v1326_v22 = vpop.permute.xlu0 %1325 }
 0x1e7   :  { %v3452_v40 = vpop.permute.xlu1 %1240  ;;  %v1569_v32 = vadd.f32 %v1326_v22, %v1269_v47  ;;  %v1878_v22 = vld [vmem:[%s4001_s0 + $0x38] sm:$0xff] }
 0x1e8   :  { %v1275_v11 = vmul.f32 %v1878_v22, %v3243_v29  ;;  %v968_v29 = vld [vmem:[%s4004_s3] sm:$0xff] }
 0x1e9   :  { %v1619_v15 = vadd.f32 %v1569_v32, %v969_v34 }
 0x1ea   :  { %v1336_v6 = vpop.permute.xlu0 %1335 }
 0x1eb   :  { %v1669_v41 = vmax.f32 %v1619_v15, 0.0  ;;  %v3461_v62 = vpop.permute.xlu1 %1250  ;;  %v1571_v55 = vadd.f32 %v1336_v6, %v1271_v17  ;;  %v1268_v17 = vmul.f32 %v1879_v18, %v3194_v48  ;;  %v975_v15 = vld [vmem:[%s4004_s3 + $0x38] sm:$0xff] }
 0x1ed   :  { %1719 = vst.msk [vmem:[%s4005_s4 + $0x8] sm:$0xff] %vm67_vm0, %v1669_v41  ;;  %v1621_v36 = vadd.f32 %v1571_v55, %v971_v12 }
 0x1ee   :  { %v1346_v19 = vpop.permute.xlu0 %1345 }
 0x1ef   :  { %v1671_v16 = vmax.f32 %v1621_v36, 0.0  ;;  %v3474_v47 = vpop.permute.xlu1 %1260  ;;  %v1573_v34 = vadd.f32 %v1346_v19, %v1273_v4  ;;  %v1880_v4 = vld [vmem:[%s4001_s0 + $0x48] sm:$0xff] }
 0x1f0   :  { %v1277_v36 = vmul.f32 %v1880_v4, %v3208_v37  ;;  %v970_v37 = vld [vmem:[%s4004_s3 + $0x10] sm:$0xff] }
 0x1f1   :  { %1721 = vst.msk [vmem:[%s4005_s4 + $0x18] sm:$0xff] %vm67_vm0, %v1671_v16  ;;  %v1623_v32 = vadd.f32 %v1573_v34, %v973_v46  ;;  %v1881_v46 = vld [vmem:[%s4001_s0 + $0x10] sm:$0xff]  ;;  %v977_v34 = vld [vmem:[%s4004_s3 + $0x48] sm:$0xff] }
 0x1f2   :  { %v1356_v12 = vpop.permute.xlu0 %1355  ;;  %v1270_v19 = vmul.f32 %v1881_v46, %v3175_v63 }
 0x1f3   :  { %v1673_v6 = vmax.f32 %v1623_v32, 0.0  ;;  %v1321_v41 = vpop.permute.xlu1 %1320  ;;  %v1575_v55 = vadd.f32 %v1356_v12, %v1275_v11  ;;  %v1882_v12 = vld [vmem:[%s4001_s0 + $0x58] sm:$0xff] }
 0x1f4   :  { %v1568_v54 = vadd.f32 %v1321_v41, %v1268_v17  ;;  %v1279_v63 = vmul.f32 %v1882_v12, %v3222_v53  ;;  %v979_v53 = vld [vmem:[%s4004_s3 + $0x58] sm:$0xff] }
 0x1f5   :  { %1723 = vst.msk [vmem:[%s4005_s4 + $0x28] sm:$0xff] %vm67_vm0, %v1673_v6  ;;  %v1625_v48 = vadd.f32 %v1575_v55, %v975_v15 }
 0x1f6   :  { %v1618_v16 = vadd.f32 %v1568_v54, %v968_v29  ;;  %v1366_v22 = vpop.permute.xlu0 %1365  ;;  %v1883_v29 = vld [vmem:[%s4001_s0 + $0x20] sm:$0xff] }
 0x1f7   :  { %v1675_v11 = vmax.f32 %v1625_v48, 0.0  ;;  %v1331_v32 = vpop.permute.xlu1 %1330  ;;  %v1577_v18 = vadd.f32 %v1366_v22, %v1277_v36  ;;  %v1272_v41 = vmul.f32 %v1883_v29, %v3201_v24  ;;  %v972_v36 = vld [vmem:[%s4004_s3 + $0x20] sm:$0xff]  ;;  %v1886_v29 = vld [vmem:[%s4001_s0 + $0x78] sm:$0xff] }
 0x1f8   :  { %v1668_v17 = vmax.f32 %v1618_v16, 0.0  ;;  %v1570_v15 = vadd.f32 %v1331_v32, %v1270_v19  ;;  %v1884_v16 = vld [vmem:[%s4001_s0 + $0x68] sm:$0xff] }
 0x1f9   :  { %1725 = vst.msk [vmem:[%s4005_s4 + $0x38] sm:$0xff] %vm67_vm0, %v1675_v11  ;;  %v1627_v6 = vadd.f32 %v1577_v18, %v977_v34  ;;  %v1281_v34 = vmul.f32 %v1884_v16, %v3236_v3  ;;  %v1885_v11 = vld [vmem:[%s4001_s0 + $0x30] sm:$0xff]  ;;  %v981_v3 = vld [vmem:[%s4004_s3 + $0x68] sm:$0xff] }
 0x1fa   :  { %1718 = vst.msk [vmem:[%s4005_s4] sm:$0xff] %vm67_vm0, %v1668_v17  ;;  %v1620_v55 = vadd.f32 %v1570_v15, %v970_v37  ;;  %v1376_v54 = vpop.permute.xlu0 %1375  ;;  %v1274_v37 = vmul.f32 %v1885_v11, %v3229_v23  ;;  %v974_v15 = vld [vmem:[%s4004_s3 + $0x30] sm:$0xff] }
 0x1fb   :  { %v1677_v4 = vmax.f32 %v1627_v6, 0.0  ;;  %v1341_v48 = vpop.permute.xlu1 %1340  ;;  %v1579_v46 = vadd.f32 %v1376_v54, %v1279_v63 }
 0x1fc   :  { %v1670_v19 = vmax.f32 %v1620_v55, 0.0  ;;  %v1572_v24 = vadd.f32 %v1341_v48, %v1272_v41  ;;  %v1283_v41 = vmul.f32 %v1886_v29, %v3250_v25  ;;  %v983_v25 = vld [vmem:[%s4004_s3 + $0x78] sm:$0xff] }
 0x1fd   :  { %1727 = vst.msk [vmem:[%s4005_s4 + $0x48] sm:$0xff] %vm67_vm0, %v1677_v4  ;;  %v1629_v22 = vadd.f32 %v1579_v46, %v979_v53  ;;  %v1887_v53 = vld [vmem:[%s4001_s0 + $0x40] sm:$0xff] }
 0x1fe   :  { %1720 = vst.msk [vmem:[%s4005_s4 + $0x10] sm:$0xff] %vm67_vm0, %v1670_v19  ;;  %v1622_v32 = vadd.f32 %v1572_v24, %v972_v36  ;;  %v1386_v18 = vpop.permute.xlu0 %1385  ;;  %v1276_v54 = vmul.f32 %v1887_v53, %v3257_v21  ;;  %v976_v46 = vld [vmem:[%s4004_s3 + $0x40] sm:$0xff] }
 0x1ff   :  { %v1679_v17 = vmax.f32 %v1629_v22, 0.0  ;;  %v1351_v12 = vpop.permute.xlu1 %1350  ;;  %v1581_v63 = vadd.f32 %v1386_v18, %v1281_v34  ;;  %v1888_v34 = vld [vmem:[%s4001_s0 + $0x88] sm:$0xff] }
 0x200   :  { %v1672_v6 = vmax.f32 %v1622_v32, 0.0  ;;  %v1574_v23 = vadd.f32 %v1351_v12, %v1274_v37  ;;  %v1285_v22 = vmul.f32 %v1888_v34, %v3264_v44  ;;  %v1889_v37 = vld [vmem:[%s4001_s0 + $0x50] sm:$0xff]  ;;  %v985_v44 = vld [vmem:[%s4004_s3 + $0x88] sm:$0xff] }
 0x201   :  { %1729 = vst.msk [vmem:[%s4005_s4 + $0x58] sm:$0xff] %vm67_vm0, %v1679_v17  ;;  %v1631_v55 = vadd.f32 %v1581_v63, %v981_v3  ;;  %v1278_v32 = vmul.f32 %v1889_v37, %v3271_v10  ;;  %v1893_v34 = vld [vmem:[%s4001_s0 + $0x70] sm:$0xff] }
 0x202   :  { %1722 = vst.msk [vmem:[%s4005_s4 + $0x20] sm:$0xff] %vm67_vm0, %v1672_v6  ;;  %v1624_v4 = vadd.f32 %v1574_v23, %v974_v15  ;;  %v1396_v36 = vpop.permute.xlu0 %1395  ;;  %v978_v15 = vld [vmem:[%s4004_s3 + $0x50] sm:$0xff]  ;;  %v1890_v23 = vld [vmem:[%s4001_s0 + $0x98] sm:$0xff] }
 0x203   :  { %v1681_v48 = vmax.f32 %v1631_v55, 0.0  ;;  %v1361_v19 = vpop.permute.xlu1 %1360  ;;  %v1583_v24 = vadd.f32 %v1396_v36, %v1283_v41  ;;  %v1287_v29 = vmul.f32 %v1890_v23, %v3278_v60  ;;  %v1891_v55 = vld [vmem:[%s4001_s0 + $0x60] sm:$0xff]  ;;  %v987_v60 = vld [vmem:[%s4004_s3 + $0x98] sm:$0xff] }
 0x204   :  { %v1674_v16 = vmax.f32 %v1624_v4, 0.0  ;;  %v1576_v21 = vadd.f32 %v1361_v19, %v1276_v54  ;;  %v1280_v53 = vmul.f32 %v1891_v55, %v3285_v27  ;;  %v980_v36 = vld [vmem:[%s4004_s3 + $0x60] sm:$0xff] }
 0x205   :  { %1731 = vst.msk [vmem:[%s4005_s4 + $0x68] sm:$0xff] %vm67_vm0, %v1681_v48  ;;  %v1633_v11 = vadd.f32 %v1583_v24, %v983_v25  ;;  %v1892_v24 = vld [vmem:[%s4001_s0 + $0xa8] sm:$0xff]  ;;  %v984_v55 = vld [vmem:[%s4004_s3 + $0x80] sm:$0xff] }
 0x206   :  { %1724 = vst.msk [vmem:[%s4005_s4 + $0x30] sm:$0xff] %vm67_vm0, %v1674_v16  ;;  %v1626_v3 = vadd.f32 %v1576_v21, %v976_v46  ;;  %v1406_v18 = vpop.permute.xlu0 %1405  ;;  %v1289_v16 = vmul.f32 %v1892_v24, %v3292_v51  ;;  %v989_v51 = vld [vmem:[%s4004_s3 + $0xa8] sm:$0xff] }
 0x207   :  { %v1683_v17 = vmax.f32 %v1633_v11, 0.0  ;;  %v1371_v12 = vpop.permute.xlu1 %1370  ;;  %v1585_v63 = vadd.f32 %v1406_v18, %v1285_v22  ;;  %v1282_v22 = vmul.f32 %v1893_v34, %v3299_v1 }
 0x208   :  { %v1676_v6 = vmax.f32 %v1626_v3, 0.0  ;;  %v1578_v10 = vadd.f32 %v1371_v12, %v1278_v32  ;;  %v982_v3 = vld [vmem:[%s4004_s3 + $0x70] sm:$0xff] }
 0x209   :  { %1733 = vst.msk [vmem:[%s4005_s4 + $0x78] sm:$0xff] %vm67_vm0, %v1683_v17  ;;  %v1635_v41 = vadd.f32 %v1585_v63, %v985_v44 }
 0x20a   :  { %1726 = vst.msk [vmem:[%s4005_s4 + $0x40] sm:$0xff] %vm67_vm0, %v1676_v6  ;;  %v1628_v54 = vadd.f32 %v1578_v10, %v978_v15  ;;  %v1416_v4 = vpop.permute.xlu0 %1415  ;;  %v1894_v15 = vld [vmem:[%s4001_s0 + $0xb8] sm:$0xff]  ;;  %v1895_v6 = vld [vmem:[%s4001_s0 + $0x80] sm:$0xff] }
 0x20b   :  { %v1685_v25 = vmax.f32 %v1635_v41, 0.0  ;;  %v1381_v48 = vpop.permute.xlu1 %1380  ;;  %v1587_v46 = vadd.f32 %v1416_v4, %v1287_v29  ;;  %v1291_v12 = vmul.f32 %v1894_v15, %v3306_v56  ;;  %v1284_v10 = vmul.f32 %v1895_v6, %v3313_v49  ;;  %v991_v56 = vld [vmem:[%s4004_s3 + $0xb8] sm:$0xff]  ;;  %v1896_v4 = vld [vmem:[%s4001_s0 + $0xc8] sm:$0xff] }
 0x20c   :  { %v1678_v19 = vmax.f32 %v1628_v54, 0.0  ;;  %v1580_v27 = vadd.f32 %v1381_v48, %v1280_v53  ;;  %v1897_v48 = vld [vmem:[%s4001_s0 + $0x90] sm:$0xff]  ;;  %v1900_v6 = vld [vmem:[%s4001_s0 + $0xe8] sm:$0xff] }
 0x20d   :  { %1735 = vst.msk [vmem:[%s4005_s4 + $0x88] sm:$0xff] %vm67_vm0, %v1685_v25  ;;  %v1637_v21 = vadd.f32 %v1587_v46, %v987_v60  ;;  %v1293_v25 = vmul.f32 %v1896_v4, %v3320_v43  ;;  %v1286_v46 = vmul.f32 %v1897_v48, %v3327_v26  ;;  %v993_v43 = vld [vmem:[%s4004_s3 + $0xc8] sm:$0xff] }
 0x20e   :  { %1728 = vst.msk [vmem:[%s4005_s4 + $0x50] sm:$0xff] %vm67_vm0, %v1678_v19  ;;  %v1630_v11 = vadd.f32 %v1580_v27, %v980_v36  ;;  %v1426_v37 = vpop.permute.xlu0 %1425 }
 0x20f   :  { %v1687_v32 = vmax.f32 %v1637_v21, 0.0  ;;  %v1391_v44 = vpop.permute.xlu1 %1390  ;;  %v1589_v18 = vadd.f32 %v1426_v37, %v1289_v16  ;;  %v986_v16 = vld [vmem:[%s4004_s3 + $0x90] sm:$0xff] }
 0x210   :  { %v1680_v17 = vmax.f32 %v1630_v11, 0.0  ;;  %v1582_v1 = vadd.f32 %v1391_v44, %v1282_v22  ;;  %v1898_v11 = vld [vmem:[%s4001_s0 + $0xd8] sm:$0xff] }
 0x211   :  { %1737 = vst.msk [vmem:[%s4005_s4 + $0x98] sm:$0xff] %vm67_vm0, %v1687_v32  ;;  %v1639_v63 = vadd.f32 %v1589_v18, %v989_v51  ;;  %v1295_v51 = vmul.f32 %v1898_v11, %v3334_v5  ;;  %v1899_v32 = vld [vmem:[%s4001_s0 + $0xa0] sm:$0xff]  ;;  %v995_v5 = vld [vmem:[%s4004_s3 + $0xd8] sm:$0xff] }
 0x212   :  { %1730 = vst.msk [vmem:[%s4005_s4 + $0x60] sm:$0xff] %vm67_vm0, %v1680_v17  ;;  %v1632_v23 = vadd.f32 %v1582_v1, %v982_v3  ;;  %v1436_v29 = vpop.permute.xlu0 %1435  ;;  %v1288_v3 = vmul.f32 %v1899_v32, %v3341_v50  ;;  %v988_v1 = vld [vmem:[%s4004_s3 + $0xa0] sm:$0xff] }
 0x213   :  { %v1689_v41 = vmax.f32 %v1639_v63, 0.0  ;;  %v1401_v53 = vpop.permute.xlu1 %1400  ;;  %v1591_v54 = vadd.f32 %v1436_v29, %v1291_v12 }
 0x214   :  { %v1682_v60 = vmax.f32 %v1632_v23, 0.0  ;;  %v1584_v49 = vadd.f32 %v1401_v53, %v1284_v10  ;;  %v1297_v10 = vmul.f32 %v1900_v6, %v3348_v33  ;;  %v997_v33 = vld [vmem:[%s4004_s3 + $0xe8] sm:$0xff]  ;;  %v1907_v6 = vld [vmem:[%s4001_s0 + $0xe0] sm:$0xff] }
 0x215   :  { %1739 = vst.msk [vmem:[%s4005_s4 + $0xa8] sm:$0xff] %vm67_vm0, %v1689_v41  ;;  %v1641_v36 = vadd.f32 %v1591_v54, %v991_v56  ;;  %v1901_v56 = vld [vmem:[%s4001_s0 + $0xb0] sm:$0xff] }
 0x216   :  { %1732 = vst.msk [vmem:[%s4005_s4 + $0x70] sm:$0xff] %vm67_vm0, %v1682_v60  ;;  %v1634_v19 = vadd.f32 %v1584_v49, %v984_v55  ;;  %v1446_v27 = vpop.permute.xlu0 %1445  ;;  %v1290_v29 = vmul.f32 %v1901_v56, %v3355_v14  ;;  %v990_v54 = vld [vmem:[%s4004_s3 + $0xb0] sm:$0xff] }
 0x217   :  { %v1691_v24 = vmax.f32 %v1641_v36, 0.0  ;;  %v1411_v21 = vpop.permute.xlu1 %1410  ;;  %v1593_v34 = vadd.f32 %v1446_v27, %v1293_v25  ;;  %v1902_v25 = vld [vmem:[%s4001_s0 + $0xf8] sm:$0xff] }
 0x218   :  { %v1684_v22 = vmax.f32 %v1634_v19, 0.0  ;;  %v1586_v26 = vadd.f32 %v1411_v21, %v1286_v46  ;;  %v1299_v36 = vmul.f32 %v1902_v25, %v3362_v35  ;;  %v1903_v46 = vld [vmem:[%s4001_s0 + $0xc0] sm:$0xff]  ;;  %v999_v35 = vld [vmem:[%s4004_s3 + $0xf8] sm:$0xff] }
 0x219   :  { %1741 = vst.msk [vmem:[%s4005_s4 + $0xb8] sm:$0xff] %vm67_vm0, %v1691_v24  ;;  %v1643_v37 = vadd.f32 %v1593_v34, %v993_v43  ;;  %v1292_v19 = vmul.f32 %v1903_v46, %v3369_v61  ;;  %v998_v46 = vld [vmem:[%s4004_s3 + $0xf0] sm:$0xff] }
 0x21a   :  { %1734 = vst.msk [vmem:[%s4005_s4 + $0x80] sm:$0xff] %vm67_vm0, %v1684_v22  ;;  %v1636_v44 = vadd.f32 %v1586_v26, %v986_v16  ;;  %v1456_v18 = vpop.permute.xlu0 %1455  ;;  %v992_v16 = vld [vmem:[%s4004_s3 + $0xc0] sm:$0xff]  ;;  %v1904_v26 = vld [vmem:[%s4001_s0 + $0x108] sm:$0xff] }
 0x21b   :  { %v1693_v17 = vmax.f32 %v1643_v37, 0.0  ;;  %v1421_v15 = vpop.permute.xlu1 %1420  ;;  %v1595_v12 = vadd.f32 %v1456_v18, %v1295_v51  ;;  %v1301_v11 = vmul.f32 %v1904_v26, %v3376_v0  ;;  %v1905_v37 = vld [vmem:[%s4001_s0 + $0xd0] sm:$0xff]  ;;  %v1001_v0 = vld [vmem:[%s4004_s3 + $0x108] sm:$0xff] }
 0x21c   :  { %v1686_v63 = vmax.f32 %v1636_v44, 0.0  ;;  %v1588_v50 = vadd.f32 %v1421_v15, %v1288_v3  ;;  %v1294_v32 = vmul.f32 %v1905_v37, %v3383_v42  ;;  %v994_v18 = vld [vmem:[%s4004_s3 + $0xd0] sm:$0xff] }
 0x21d   :  { %1743 = vst.msk [vmem:[%s4005_s4 + $0xc8] sm:$0xff] %vm67_vm0, %v1693_v17  ;;  %v1645_v23 = vadd.f32 %v1595_v12, %v995_v5  ;;  %v1906_v12 = vld [vmem:[%s4001_s0 + $0x118] sm:$0xff] }
 0x21e   :  { %1736 = vst.msk [vmem:[%s4005_s4 + $0x90] sm:$0xff] %vm67_vm0, %v1686_v63  ;;  %v1638_v41 = vadd.f32 %v1588_v50, %v988_v1  ;;  %v1466_v55 = vpop.permute.xlu0 %1465  ;;  %v1303_v63 = vmul.f32 %v1906_v12, %v3390_v13  ;;  %v1003_v13 = vld [vmem:[%s4004_s3 + $0x118] sm:$0xff] }
 0x21f   :  { %v1695_v53 = vmax.f32 %v1645_v23, 0.0  ;;  %v1431_v60 = vpop.permute.xlu1 %1430  ;;  %v1597_v49 = vadd.f32 %v1466_v55, %v1297_v10  ;;  %v1296_v10 = vmul.f32 %v1907_v6, %v3397_v9  ;;  %v1914_v6 = vld [vmem:[%s4001_s0 + $0x158] sm:$0xff] }
 0x220   :  { %v1688_v4 = vmax.f32 %v1638_v41, 0.0  ;;  %v1590_v14 = vadd.f32 %v1431_v60, %v1290_v29  ;;  %v996_v41 = vld [vmem:[%s4004_s3 + $0xe0] sm:$0xff] }
 0x221   :  { %1745 = vst.msk [vmem:[%s4005_s4 + $0xd8] sm:$0xff] %vm67_vm0, %v1695_v53  ;;  %v1647_v48 = vadd.f32 %v1597_v49, %v997_v33 }
 0x222   :  { %1738 = vst.msk [vmem:[%s4005_s4 + $0xa0] sm:$0xff] %vm67_vm0, %v1688_v4  ;;  %v1640_v43 = vadd.f32 %v1590_v14, %v990_v54  ;;  %v1476_v27 = vpop.permute.xlu0 %1475  ;;  %v1908_v54 = vld [vmem:[%s4001_s0 + $0x128] sm:$0xff]  ;;  %v1909_v4 = vld [vmem:[%s4001_s0 + $0xf0] sm:$0xff] }
 0x223   :  { %v1697_v24 = vmax.f32 %v1647_v48, 0.0  ;;  %v1441_v21 = vpop.permute.xlu1 %1440  ;;  %v1599_v34 = vadd.f32 %v1476_v27, %v1299_v36  ;;  %v1305_v60 = vmul.f32 %v1908_v54, %v3402_v59  ;;  %v1298_v14 = vmul.f32 %v1909_v4, %v3406_v52  ;;  %v1005_v59 = vld [vmem:[%s4004_s3 + $0x128] sm:$0xff]  ;;  %v1910_v27 = vld [vmem:[%s4001_s0 + $0x138] sm:$0xff] }
 0x224   :  { %v1690_v22 = vmax.f32 %v1640_v43, 0.0  ;;  %v1592_v61 = vadd.f32 %v1441_v21, %v1292_v19  ;;  %v1911_v21 = vld [vmem:[%s4001_s0 + $0x100] sm:$0xff] }
 0x225   :  { %1747 = vst.msk [vmem:[%s4005_s4 + $0xe8] sm:$0xff] %vm67_vm0, %v1697_v24  ;;  %v1649_v51 = vadd.f32 %v1599_v34, %v999_v35  ;;  %v1307_v24 = vmul.f32 %v1910_v27, %v3411_v30  ;;  %v1300_v34 = vmul.f32 %v1911_v21, %v3415_v58  ;;  %v1007_v30 = vld [vmem:[%s4004_s3 + $0x138] sm:$0xff] }
 0x226   :  { %1740 = vst.msk [vmem:[%s4005_s4 + $0xb0] sm:$0xff] %vm67_vm0, %v1690_v22  ;;  %v1642_v3 = vadd.f32 %v1592_v61, %v992_v16  ;;  %v1486_v44 = vpop.permute.xlu0 %1485 }
 0x227   :  { %v1699_v5 = vmax.f32 %v1649_v51, 0.0  ;;  %v1451_v17 = vpop.permute.xlu1 %1450  ;;  %v1601_v1 = vadd.f32 %v1486_v44, %v1301_v11  ;;  %v1000_v11 = vld [vmem:[%s4004_s3 + $0x100] sm:$0xff] }
 0x228   :  { %v1692_v15 = vmax.f32 %v1642_v3, 0.0  ;;  %v1594_v42 = vadd.f32 %v1451_v17, %v1294_v32  ;;  %v1912_v3 = vld [vmem:[%s4001_s0 + $0x148] sm:$0xff] }
 0x229   :  { %1749 = vst.msk [vmem:[%s4005_s4 + $0xf8] sm:$0xff] %vm67_vm0, %v1699_v5  ;;  %v1651_v50 = vadd.f32 %v1601_v1, %v1001_v0  ;;  %v1309_v0 = vmul.f32 %v1912_v3, %v3420_v8  ;;  %v1913_v5 = vld [vmem:[%s4001_s0 + $0x110] sm:$0xff]  ;;  %v1009_v8 = vld [vmem:[%s4004_s3 + $0x148] sm:$0xff] }
 0x22a   :  { %1742 = vst.msk [vmem:[%s4005_s4 + $0xc0] sm:$0xff] %vm67_vm0, %v1692_v15  ;;  %v1644_v23 = vadd.f32 %v1594_v42, %v994_v18  ;;  %v1496_v56 = vpop.permute.xlu0 %1495  ;;  %v1302_v18 = vmul.f32 %v1913_v5, %v3424_v39  ;;  %v1002_v42 = vld [vmem:[%s4004_s3 + $0x110] sm:$0xff] }
 0x22b   :  { %v1701_v29 = vmax.f32 %v1651_v50, 0.0  ;;  %v1461_v33 = vpop.permute.xlu1 %1460  ;;  %v1603_v55 = vadd.f32 %v1496_v56, %v1303_v63  ;;  %v1921_v3 = vld [vmem:[%s4001_s0 + $0x150] sm:$0xff] }
 0x22c   :  { %v1694_v53 = vmax.f32 %v1644_v23, 0.0  ;;  %v1596_v9 = vadd.f32 %v1461_v33, %v1296_v10  ;;  %v1311_v10 = vmul.f32 %v1914_v6, %v3429_v2  ;;  %v1011_v2 = vld [vmem:[%s4004_s3 + $0x158] sm:$0xff]  ;;  %v1012_v6 = vld [vmem:[%s4004_s3 + $0x160] sm:$0xff] }
 0x22d   :  { %1751 = vst.msk [vmem:[%s4005_s4 + $0x108] sm:$0xff] %vm67_vm0, %v1701_v29  ;;  %v1653_v49 = vadd.f32 %v1603_v55, %v1003_v13  ;;  %v1915_v13 = vld [vmem:[%s4001_s0 + $0x120] sm:$0xff] }
 0x22e   :  { %1744 = vst.msk [vmem:[%s4005_s4 + $0xd0] sm:$0xff] %vm67_vm0, %v1694_v53  ;;  %v1646_v25 = vadd.f32 %v1596_v9, %v996_v41  ;;  %v1506_v36 = vpop.permute.xlu0 %1505  ;;  %v1304_v56 = vmul.f32 %v1915_v13, %v3431_v31  ;;  %v1004_v55 = vld [vmem:[%s4004_s3 + $0x120] sm:$0xff] }
 0x22f   :  { %v1703_v48 = vmax.f32 %v1653_v49, 0.0  ;;  %v1471_v19 = vpop.permute.xlu1 %1470  ;;  %v1605_v43 = vadd.f32 %v1506_v36, %v1305_v60  ;;  %v1916_v60 = vld [vmem:[%s4001_s0 + $0x168] sm:$0xff] }
 0x230   :  { %v1696_v35 = vmax.f32 %v1646_v25, 0.0  ;;  %v1598_v52 = vadd.f32 %v1471_v19, %v1298_v14  ;;  %v1313_v49 = vmul.f32 %v1916_v60, %v3433_v28  ;;  %v1917_v14 = vld [vmem:[%s4001_s0 + $0x130] sm:$0xff]  ;;  %v1013_v28 = vld [vmem:[%s4004_s3 + $0x168] sm:$0xff] }
 0x231   :  { %1753 = vst.msk [vmem:[%s4005_s4 + $0x118] sm:$0xff] %vm67_vm0, %v1703_v48  ;;  %v1655_v16 = vadd.f32 %v1605_v43, %v1005_v59  ;;  %v1306_v25 = vmul.f32 %v1917_v14, %v3435_v45 }
 0x232   :  { %1746 = vst.msk [vmem:[%s4005_s4 + $0xe0] sm:$0xff] %vm67_vm0, %v1696_v35  ;;  %v1648_v22 = vadd.f32 %v1598_v52, %v998_v46  ;;  %v1516_v61 = vpop.permute.xlu0 %1515  ;;  %v1006_v46 = vld [vmem:[%s4004_s3 + $0x130] sm:$0xff]  ;;  %v1918_v52 = vld [vmem:[%s4001_s0 + $0x178] sm:$0xff] }
 0x233   :  { %v1705_v26 = vmax.f32 %v1655_v16, 0.0  ;;  %v1481_v51 = vpop.permute.xlu1 %1480  ;;  %v1607_v37 = vadd.f32 %v1516_v61, %v1307_v24  ;;  %v1315_v27 = vmul.f32 %v1918_v52, %v3437_v38  ;;  %v1919_v16 = vld [vmem:[%s4001_s0 + $0x140] sm:$0xff]  ;;  %v1015_v38 = vld [vmem:[%s4004_s3 + $0x178] sm:$0xff] }
 0x234   :  { %v1698_v32 = vmax.f32 %v1648_v22, 0.0  ;;  %v1600_v58 = vadd.f32 %v1481_v51, %v1300_v34  ;;  %v1308_v21 = vmul.f32 %v1919_v16, %v3439_v57  ;;  %v1008_v61 = vld [vmem:[%s4004_s3 + $0x140] sm:$0xff] }
 0x235   :  { %1755 = vst.msk [vmem:[%s4005_s4 + $0x128] sm:$0xff] %vm67_vm0, %v1705_v26  ;;  %v1657_v44 = vadd.f32 %v1607_v37, %v1007_v30  ;;  %v1920_v37 = vld [vmem:[%s4001_s0 + $0x188] sm:$0xff] }
 0x236   :  { %1748 = vst.msk [vmem:[%s4005_s4 + $0xf0] sm:$0xff] %vm67_vm0, %v1698_v32  ;;  %v1650_v17 = vadd.f32 %v1600_v58, %v1000_v11  ;;  %v1526_v1 = vpop.permute.xlu0 %1525  ;;  %v1317_v32 = vmul.f32 %v1920_v37, %v3441_v20  ;;  %v1017_v20 = vld [vmem:[%s4004_s3 + $0x188] sm:$0xff] }
 0x237   :  { %v1707_v15 = vmax.f32 %v1657_v44, 0.0  ;;  %v1491_v12 = vpop.permute.xlu1 %1490  ;;  %v1609_v63 = vadd.f32 %v1526_v1, %v1309_v0  ;;  %v1310_v0 = vmul.f32 %v1921_v3, %v3443_v7 }
 0x238   :  { %v1700_v50 = vmax.f32 %v1650_v17, 0.0  ;;  %v1602_v39 = vadd.f32 %v1491_v12, %v1302_v18  ;;  %v1010_v17 = vld [vmem:[%s4004_s3 + $0x150] sm:$0xff]  ;;  %v1922_v12 = vld [vmem:[%s4001_s0 + $0x160] sm:$0xff] }
 0x239   :  { %1757 = vst.msk [vmem:[%s4005_s4 + $0x138] sm:$0xff] %vm67_vm0, %v1707_v15  ;;  %v1659_v23 = vadd.f32 %v1609_v63, %v1009_v8  ;;  %v1312_v63 = vmul.f32 %v1922_v12, %v3452_v40  ;;  %v1923_v40 = vld [vmem:[%s4001_s0 + $0x170] sm:$0xff] }
 0x23a   :  { %1750 = vst.msk [vmem:[%s4005_s4 + $0x100] sm:$0xff] %vm67_vm0, %v1700_v50  ;;  %v1652_v29 = vadd.f32 %v1602_v39, %v1002_v42  ;;  %v1536_v41 = vpop.permute.xlu0 %1535 }
 0x23b   :  { %v1709_v33 = vmax.f32 %v1659_v23, 0.0  ;;  %v1501_v53 = vpop.permute.xlu1 %1500  ;;  %v1611_v9 = vadd.f32 %v1536_v41, %v1311_v10 }
 0x23c   :  { %v1702_v54 = vmax.f32 %v1652_v29, 0.0  ;;  %v1604_v31 = vadd.f32 %v1501_v53, %v1304_v56  ;;  %v1314_v56 = vmul.f32 %v1923_v40, %v3461_v62  ;;  %v1924_v53 = vld [vmem:[%s4001_s0 + $0x180] sm:$0xff] }
 0x23d   :  { %1759 = vst.msk [vmem:[%s4005_s4 + $0x148] sm:$0xff] %vm67_vm0, %v1709_v33  ;;  %v1661_v4 = vadd.f32 %v1611_v9, %v1011_v2  ;;  %v1014_v2 = vld [vmem:[%s4004_s3 + $0x170] sm:$0xff]  ;;  %v1316_v9 = vmul.f32 %v1924_v53, %v3474_v47 }
 0x23e   :  { %1752 = vst.msk [vmem:[%s4005_s4 + $0x110] sm:$0xff] %vm67_vm0, %v1702_v54  ;;  %v1654_v59 = vadd.f32 %v1604_v31, %v1004_v55  ;;  %v1546_v36 = vpop.permute.xlu0 %1545  ;;  %v1016_v54 = vld [vmem:[%s4004_s3 + $0x180] sm:$0xff] }
 0x23f   :  { %v1711_v48 = vmax.f32 %v1661_v4, 0.0  ;;  %v1511_v19 = vpop.permute.xlu1 %1510  ;;  %v1613_v43 = vadd.f32 %v1546_v36, %v1313_v49 }
 0x240   :  { %v1704_v35 = vmax.f32 %v1654_v59, 0.0  ;;  %v1606_v45 = vadd.f32 %v1511_v19, %v1306_v25 }
 0x241   :  { %1761 = vst.msk [vmem:[%s4005_s4 + $0x158] sm:$0xff] %vm67_vm0, %v1711_v48  ;;  %v1663_v24 = vadd.f32 %v1613_v43, %v1013_v28 }
 0x242   :  { %1754 = vst.msk [vmem:[%s4005_s4 + $0x120] sm:$0xff] %vm67_vm0, %v1704_v35  ;;  %v1656_v34 = vadd.f32 %v1606_v45, %v1006_v46  ;;  %v1556_v22 = vpop.permute.xlu0 %1555 }
 0x243   :  { %v1713_v30 = vmax.f32 %v1663_v24, 0.0  ;;  %v1521_v26 = vpop.permute.xlu1 %1520  ;;  %v1615_v11 = vadd.f32 %v1556_v22, %v1315_v27 }
 0x244   :  { %v1706_v51 = vmax.f32 %v1656_v34, 0.0  ;;  %v1608_v57 = vadd.f32 %v1521_v26, %v1308_v21 }
 0x245   :  { %1763 = vst.msk [vmem:[%s4005_s4 + $0x168] sm:$0xff] %vm67_vm0, %v1713_v30  ;;  %v1665_v58 = vadd.f32 %v1615_v11, %v1015_v38 }
 0x246   :  { %1756 = vst.msk [vmem:[%s4005_s4 + $0x130] sm:$0xff] %vm67_vm0, %v1706_v51  ;;  %v1658_v44 = vadd.f32 %v1608_v57, %v1008_v61  ;;  %v1566_v5 = vpop.permute.xlu0 %1565 }
 0x247   :  { %v1715_v18 = vmax.f32 %v1665_v58, 0.0  ;;  %v1531_v8 = vpop.permute.xlu1 %1530  ;;  %v1617_v1 = vadd.f32 %v1566_v5, %v1317_v32 }
 0x248   :  { %v1708_v15 = vmax.f32 %v1658_v44, 0.0  ;;  %v1610_v7 = vadd.f32 %v1531_v8, %v1310_v0 }
 0x249   :  { %1765 = vst.msk [vmem:[%s4005_s4 + $0x178] sm:$0xff] %vm67_vm0, %v1715_v18  ;;  %v1667_v42 = vadd.f32 %v1617_v1, %v1017_v20 }
 0x24a   :  { %1758 = vst.msk [vmem:[%s4005_s4 + $0x140] sm:$0xff] %vm67_vm0, %v1708_v15  ;;  %v1660_v50 = vadd.f32 %v1610_v7, %v1010_v17 }
 0x24b   :  { %v1717_v39 = vmax.f32 %v1667_v42, 0.0  ;;  %v1541_v10 = vpop.permute.xlu1 %1540 }
 0x24c   :  { %v1710_v23 = vmax.f32 %v1660_v50, 0.0  ;;  %v1612_v13 = vadd.f32 %v1541_v10, %v1312_v63 }
 0x24d   :  { %1767 = vst.msk [vmem:[%s4005_s4 + $0x188] sm:$0xff] %vm67_vm0, %v1717_v39 }
 0x24e   :  { %1760 = vst.msk [vmem:[%s4005_s4 + $0x150] sm:$0xff] %vm67_vm0, %v1710_v23  ;;  %v1662_v29 = vadd.f32 %v1612_v13, %v1012_v6 }
 0x24f   :  { %v1551_v41 = vpop.permute.xlu1 %1550 }
 0x250   :  { %v1712_v33 = vmax.f32 %v1662_v29, 0.0  ;;  %v1614_v55 = vadd.f32 %v1551_v41, %v1314_v56 }
 0x252   :  { %1762 = vst.msk [vmem:[%s4005_s4 + $0x160] sm:$0xff] %vm67_vm0, %v1712_v33  ;;  %v1664_v62 = vadd.f32 %v1614_v55, %v1014_v2 }
 0x253   :  { %v1561_v31 = vpop.permute.xlu1 %1560 }
 0x254   :  { %v1714_v60 = vmax.f32 %v1664_v62, 0.0  ;;  %v1616_v49 = vadd.f32 %v1561_v31, %v1316_v9 }
 0x256   :  { %1764 = vst.msk [vmem:[%s4005_s4 + $0x170] sm:$0xff] %vm67_vm0, %v1714_v60  ;;  %v1666_v4 = vadd.f32 %v1616_v49, %v1016_v54 }
 0x258   :  { %v1716_v47 = vmax.f32 %v1666_v4, 0.0 }
 0x25a   :  { %1766 = vst.msk [vmem:[%s4005_s4 + $0x180] sm:$0xff] %vm67_vm0, %v1716_v47 }

</bundles_post_ra>
